<compile_context>
chip_gen: v6e
topology: v6e:2x2x1
jax: 0.10.0
libtpu: 0.0.40
codegen_flags: <defaults>
</compile_context>

<pallas_src>
import functools
from typing import NamedTuple

import jax
import jax.numpy as jnp
from jax.experimental import pallas as pl
from jax.experimental.pallas import tpu as pltpu

LANE = 128          # vreg lane width
SUBLANE = 8         # f32 sublane grain
FEAT_DIM = 512      # backbone feature width
HIDDEN_DIM = 128    # TSHD classifier hidden width
TK_MAX = 2048       # K tile (multiple of 512), sized for v7x's 64 MiB VMEM
TM_MAX = 256        # batch tile; leading "parallel" axis feeds both v7x TCs


def _round_up(n, m):
    return ((n + m - 1) // m) * m


def _nbytes(*arrs):
    return int(sum(int(a.size) * a.dtype.itemsize for a in arrs))


class TSHDMeta(NamedTuple):
    in_features: int
    k_pad: int
    tk: int
    num_classes: int
    n_cls_pad: int
    n_bin_pad: int


_VMEM = pl.BlockSpec(memory_space=pltpu.MemorySpace.VMEM)


# ----------------------------------------------------------------------------
# Fused K-tiled kernels.  Grid = (M_tiles, K_tiles); feature matmul
# accumulates into an f32 VMEM scratch; head matmul(s) + bias + ReLU run in
# the final K step only.  Head weights are small resident full blocks.
# ----------------------------------------------------------------------------
def _accumulate(x_ref, fw_ref, acc_ref):
    @pl.when(pl.program_id(1) == 0)
    def _():
        acc_ref[...] = jnp.zeros_like(acc_ref)

    acc_ref[...] += jnp.dot(x_ref[...], fw_ref[...],
                            preferred_element_type=jnp.float32)


def _features_kernel(x_ref, fw_ref, fb_ref, o_ref, acc_ref):
    _accumulate(x_ref, fw_ref, acc_ref)

    @pl.when(pl.program_id(1) == pl.num_programs(1) - 1)
    def _():
        o_ref[...] = jnp.maximum(acc_ref[...] + fb_ref[...], 0.0)


def _fused_cls_kernel(x_ref, fw_ref, fb_ref, lw_ref, lb_ref, o_ref, acc_ref):
    _accumulate(x_ref, fw_ref, acc_ref)

    @pl.when(pl.program_id(1) == pl.num_programs(1) - 1)
    def _():
        feats = jnp.maximum(acc_ref[...] + fb_ref[...], 0.0).astype(jnp.bfloat16)
        o_ref[...] = (jnp.dot(feats, lw_ref[...],
                              preferred_element_type=jnp.float32) + lb_ref[...])


def _fused_bin_kernel(x_ref, fw_ref, fb_ref, w1_ref, b1_ref, w2_ref, b2_ref,
                      o_ref, acc_ref):
    _accumulate(x_ref, fw_ref, acc_ref)

    @pl.when(pl.program_id(1) == pl.num_programs(1) - 1)
    def _():
        feats = jnp.maximum(acc_ref[...] + fb_ref[...], 0.0).astype(jnp.bfloat16)
        h = jnp.maximum(jnp.dot(feats, w1_ref[...],
                                preferred_element_type=jnp.float32) + b1_ref[...], 0.0)
        o_ref[...] = (jnp.dot(h.astype(jnp.bfloat16), w2_ref[...],
                              preferred_element_type=jnp.float32) + b2_ref[...])


def _fused_two_kernel(x_ref, fw_ref, fb_ref, w1_ref, b1_ref, hw_ref, hb_ref,
                      o_ref, acc_ref):
    # Both heads packed into ONE lane-dense [tm, 128] output tile:
    #   cols [0:nc]       = backbone.linear logits  (driven by feats rows 0:512)
    #   cols [nc:nc+2]    = binary-head logits      (driven by hidden rows 512:640)
    _accumulate(x_ref, fw_ref, acc_ref)

    @pl.when(pl.program_id(1) == pl.num_programs(1) - 1)
    def _():
        feats = jnp.maximum(acc_ref[...] + fb_ref[...], 0.0).astype(jnp.bfloat16)
        h = jnp.maximum(jnp.dot(feats, w1_ref[...],
                                preferred_element_type=jnp.float32) + b1_ref[...], 0.0)
        packed = jnp.concatenate([feats, h.astype(jnp.bfloat16)], axis=-1)
        o_ref[...] = (jnp.dot(packed, hw_ref[...],
                              preferred_element_type=jnp.float32) + hb_ref[...])


# Tiny head-only kernels (features -> logits); inputs are [B,512], gridless.
def _cls_head_kernel(f_ref, lw_ref, lb_ref, o_ref):
    o_ref[...] = (jnp.dot(f_ref[...], lw_ref[...],
                          preferred_element_type=jnp.float32) + lb_ref[...])


def _bin_head_kernel(f_ref, w1_ref, b1_ref, w2_ref, b2_ref, o_ref):
    h = jnp.maximum(jnp.dot(f_ref[...], w1_ref[...],
                            preferred_element_type=jnp.float32) + b1_ref[...], 0.0)
    o_ref[...] = (jnp.dot(h.astype(jnp.bfloat16), w2_ref[...],
                          preferred_element_type=jnp.float32) + b2_ref[...])


# ----------------------------------------------------------------------------
# Parameters.  Raw params mirror nn.Linear ([out, in] f32) for the reference
# check; kernel params are transposed to [in, out], zero-padded to the 128
# lane grain, and cast once to bf16.
# ----------------------------------------------------------------------------
def init_raw_params(key, in_features, num_classes=10):
    ks = jax.random.split(key, 8)
    scale = lambda fan_in: 1.0 / jnp.sqrt(jnp.float32(fan_in))
    return {
        "feat_w": jax.random.normal(ks[0], (FEAT_DIM, in_features), jnp.float32) * scale(in_features),
        "feat_b": jax.random.normal(ks[1], (FEAT_DIM,), jnp.float32) * 0.01,
        "linear_w": jax.random.normal(ks[2], (num_classes, FEAT_DIM), jnp.float32) * scale(FEAT_DIM),
        "linear_b": jax.random.normal(ks[3], (num_classes,), jnp.float32) * 0.01,
        "cls_w1": jax.random.normal(ks[4], (HIDDEN_DIM, FEAT_DIM), jnp.float32) * scale(FEAT_DIM),
        "cls_b1": jax.random.normal(ks[5], (HIDDEN_DIM,), jnp.float32) * 0.01,
        "cls_w2": jax.random.normal(ks[6], (2, HIDDEN_DIM), jnp.float32) * scale(HIDDEN_DIM),
        "cls_b2": jax.random.normal(ks[7], (2,), jnp.float32) * 0.01,
    }


def _choose_k_tiling(in_features):
    k_pad = _round_up(in_features, LANE)
    if k_pad <= TK_MAX:
        return k_pad, k_pad
    return _round_up(k_pad, TK_MAX), TK_MAX


def make_kernel_params(raw, in_features, num_classes=10):
    assert num_classes + 2 <= LANE, "packed two-head output needs num_classes + 2 <= 128"
    k_pad, tk = _choose_k_tiling(in_features)
    n_cls_pad = _round_up(num_classes, LANE)
    n_bin_pad = _round_up(2, LANE)

    def prep_w(w, k_p, n_p):
        out_d, in_d = w.shape
        wt = jnp.zeros((k_p, n_p), jnp.float32).at[:in_d, :out_d].set(w.T)
        return wt.astype(jnp.bfloat16)   # one-time [in,out] bf16: no in-kernel transpose

    def prep_b(b, n_p):
        return jnp.zeros((1, n_p), jnp.float32).at[0, : b.shape[0]].set(b)

    # Packed two-head weight for forward_two (block-structured, zeros elsewhere).
    head_w = jnp.zeros((FEAT_DIM + HIDDEN_DIM, LANE), jnp.float32)
    head_w = head_w.at[:FEAT_DIM, :num_classes].set(raw["linear_w"].T)
    head_w = head_w.at[FEAT_DIM:, num_classes:num_classes + 2].set(raw["cls_w2"].T)
    head_b = jnp.zeros((1, LANE), jnp.float32)
    head_b = head_b.at[0, :num_classes].set(raw["linear_b"])
    head_b = head_b.at[0, num_classes:num_classes + 2].set(raw["cls_b2"])

    meta = TSHDMeta(in_features=in_features, k_pad=k_pad, tk=tk,
                    num_classes=num_classes, n_cls_pad=n_cls_pad, n_bin_pad=n_bin_pad)
    params = {
        "feat_w": prep_w(raw["feat_w"], k_pad, FEAT_DIM),
        "feat_b": prep_b(raw["feat_b"], FEAT_DIM),
        "linear_w": prep_w(raw["linear_w"], FEAT_DIM, n_cls_pad),
        "linear_b": prep_b(raw["linear_b"], n_cls_pad),
        "cls_w1": prep_w(raw["cls_w1"], FEAT_DIM, HIDDEN_DIM),
        "cls_b1": prep_b(raw["cls_b1"], HIDDEN_DIM),
        "cls_w2": prep_w(raw["cls_w2"], HIDDEN_DIM, n_bin_pad),
        "cls_b2": prep_b(raw["cls_b2"], n_bin_pad),
        "head_w": head_w.astype(jnp.bfloat16),
        "head_b": head_b,
    }
    return meta, params


def _prep_input(x, k_pad):
    """NCHW -> flattened, bf16 (cast BEFORE padding), zero-padded [B_pad, K_pad]."""
    b = x.shape[0]
    if b > TM_MAX:
        b_pad, tm = _round_up(b, TM_MAX), TM_MAX
    else:
        b_pad = _round_up(max(b, SUBLANE), SUBLANE)
        tm = b_pad
    xf = x.reshape(b, -1).astype(jnp.bfloat16)
    xp = jnp.zeros((b_pad, k_pad), jnp.bfloat16).at[:b, : xf.shape[1]].set(xf)
    return xp, b_pad, tm


def _vmem_limit(tm, tk, n_out, resident_bytes):
    streamed = 2 * (tm * tk * 2 + tk * FEAT_DIM * 2)           # double-buffered x / feat_w tiles
    resident = resident_bytes + tm * FEAT_DIM * 4 + 2 * tm * n_out * 4
    want = streamed + resident + (8 << 20)                     # headroom for compiler scratch
    return int(min(max(want, 32 << 20), 64 << 20))             # never exceed v7x physical VMEM


def _run_fused(kernel, xp, feat_w, feat_b, head_arrays, n_out, b_pad, tm, meta,
               extra_flops):
    nm, nk = b_pad // tm, meta.k_pad // meta.tk
    in_specs = [
        pl.BlockSpec((tm, meta.tk), lambda m, k: (m, k)),          # activations
        pl.BlockSpec((meta.tk, FEAT_DIM), lambda m, k: (k, 0)),    # feature weight K-tile
    ] + [pl.BlockSpec(a.shape, lambda m, k: (0, 0))                # resident full blocks
         for a in (feat_b, *head_arrays)]
    args = (xp, feat_w, feat_b, *head_arrays)
    flops = 2 * b_pad * meta.k_pad * FEAT_DIM + extra_flops
    return pl.pallas_call(
        kernel,
        out_shape=jax.ShapeDtypeStruct((b_pad, n_out), jnp.float32),
        grid_spec=pltpu.PrefetchScalarGridSpec(
            num_scalar_prefetch=0,
            grid=(nm, nk),
            in_specs=in_specs,
            out_specs=pl.BlockSpec((tm, n_out), lambda m, k: (m, 0)),
            scratch_shapes=[pltpu.VMEM((tm, FEAT_DIM), jnp.float32)]),
        compiler_params=pltpu.CompilerParams(
            dimension_semantics=("parallel", "arbitrary"),
            vmem_limit_bytes=_vmem_limit(tm, meta.tk, n_out,
                                         _nbytes(feat_b, *head_arrays))),
        cost_estimate=pl.CostEstimate(
            flops=flops, transcendentals=0,
            bytes_accessed=_nbytes(*args) + b_pad * n_out * 4),
    )(*args)


# ----------------------------------------------------------------------------
# TSHD forward paths (each = ONE fused pallas_call).  Prefer tshd_forward_two
# when both heads are needed: it shares the feature matmul and weight DMA.
# ----------------------------------------------------------------------------
@functools.partial(jax.jit, static_argnums=(0,))
def tshd_get_features(meta, params, x):
    xp, b_pad, tm = _prep_input(x, meta.k_pad)
    out = _run_fused(_features_kernel, xp, params["feat_w"], params["feat_b"], (),
                     FEAT_DIM, b_pad, tm, meta, extra_flops=0)
    return out[: x.shape[0]]


@functools.partial(jax.jit, static_argnums=(0,), static_argnames=("output_options",))
def tshd_forward(meta, params, x, output_options="cls"):
    xp, b_pad, tm = _prep_input(x, meta.k_pad)
    b = x.shape[0]
    if output_options == "cls":
        out = _run_fused(
            _fused_cls_kernel, xp, params["feat_w"], params["feat_b"],
            (params["linear_w"], params["linear_b"]),
            meta.n_cls_pad, b_pad, tm, meta,
            extra_flops=2 * b_pad * FEAT_DIM * meta.n_cls_pad)
        return out[:b, : meta.num_classes]
    elif output_options == "bin":
        out = _run_fused(
            _fused_bin_kernel, xp, params["feat_w"], params["feat_b"],
            (params["cls_w1"], params["cls_b1"], params["cls_w2"], params["cls_b2"]),
            meta.n_bin_pad, b_pad, tm, meta,
            extra_flops=2 * b_pad * (FEAT_DIM * HIDDEN_DIM + HIDDEN_DIM * meta.n_bin_pad))
        return out[:b, :2]
    raise ValueError(output_options)


@functools.partial(jax.jit, static_argnums=(0,))
def tshd_forward_two(meta, params, x):
    xp, b_pad, tm = _prep_input(x, meta.k_pad)
    out = _run_fused(
        _fused_two_kernel, xp, params["feat_w"], params["feat_b"],
        (params["cls_w1"], params["cls_b1"], params["head_w"], params["head_b"]),
        LANE, b_pad, tm, meta,
        extra_flops=2 * b_pad * (FEAT_DIM * HIDDEN_DIM + (FEAT_DIM + HIDDEN_DIM) * LANE))
    b, nc = x.shape[0], meta.num_classes
    return out[:b, nc:nc + 2], out[:b, :nc]


def _pad_features(features):
    b = features.shape[0]
    b_pad = _round_up(max(b, SUBLANE), SUBLANE)
    fp = jnp.zeros((b_pad, FEAT_DIM), jnp.bfloat16).at[:b].set(features.astype(jnp.bfloat16))
    return fp, b_pad


@functools.partial(jax.jit, static_argnums=(0,))
def tshd_get_logits_cls(meta, params, features):
    fp, b_pad = _pad_features(features)
    args = (fp, params["linear_w"], params["linear_b"])
    out = pl.pallas_call(
        _cls_head_kernel,
        out_shape=jax.ShapeDtypeStruct((b_pad, meta.n_cls_pad), jnp.float32),
        in_specs=[_VMEM] * len(args), out_specs=_VMEM,
        compiler_params=pltpu.CompilerParams(vmem_limit_bytes=32 << 20),
        cost_estimate=pl.CostEstimate(
            flops=2 * b_pad * FEAT_DIM * meta.n_cls_pad, transcendentals=0,
            bytes_accessed=_nbytes(*args) + b_pad * meta.n_cls_pad * 4),
    )(*args)
    return out[: features.shape[0], : meta.num_classes]


@functools.partial(jax.jit, static_argnums=(0,))
def tshd_get_logits_bin(meta, params, features):
    fp, b_pad = _pad_features(features)
    args = (fp, params["cls_w1"], params["cls_b1"], params["cls_w2"], params["cls_b2"])
    out = pl.pallas_call(
        _bin_head_kernel,
        out_shape=jax.ShapeDtypeStruct((b_pad, meta.n_bin_pad), jnp.float32),
        in_specs=[_VMEM] * len(args), out_specs=_VMEM,
        compiler_params=pltpu.CompilerParams(vmem_limit_bytes=32 << 20),
        cost_estimate=pl.CostEstimate(
            flops=2 * b_pad * (FEAT_DIM * HIDDEN_DIM + HIDDEN_DIM * meta.n_bin_pad),
            transcendentals=0,
            bytes_accessed=_nbytes(*args) + b_pad * meta.n_bin_pad * 4),
    )(*args)
    return out[: features.shape[0], :2]


# ----------------------------------------------------------------------------
# Main: small deterministic inputs, run all paths once, verify, print KERNEL_OK.
# ----------------------------------------------------------------------------
if __name__ == "__main__":
    key = jax.random.PRNGKey(0)
    k_x, k_p = jax.random.split(key)

    B, C, H, W = 2, 4, 16, 16                       # small NCHW input
    NUM_CLASSES = 10
    x = jax.random.normal(k_x, (B, C, H, W), jnp.float32)

    raw = init_raw_params(k_p, in_features=C * H * W, num_classes=NUM_CLASSES)
    meta, params = make_kernel_params(raw, in_features=C * H * W, num_classes=NUM_CLASSES)

    logits_cls = jax.block_until_ready(tshd_forward(meta, params, x, output_options="cls"))
    logits_bin = jax.block_until_ready(tshd_forward(meta, params, x, output_options="bin"))
    lb, lc = jax.block_until_ready(tshd_forward_two(meta, params, x))
    feats_k = jax.block_until_ready(tshd_get_features(meta, params, x))
    head_cls = jax.block_until_ready(tshd_get_logits_cls(meta, params, feats_k))
    head_bin = jax.block_until_ready(tshd_get_logits_bin(meta, params, feats_k))

    assert logits_cls.shape == (B, NUM_CLASSES)
    assert logits_bin.shape == (B, 2)
    assert lb.shape == (B, 2) and lc.shape == (B, NUM_CLASSES)
    assert feats_k.shape == (B, FEAT_DIM)
    assert head_cls.shape == (B, NUM_CLASSES) and head_bin.shape == (B, 2)

    # Pure-JAX reference with the same bf16-matmul / f32-epilogue math.
    bf = lambda a: a.astype(jnp.bfloat16).astype(jnp.float32)
    xf = bf(x.reshape(B, -1))
    feats_ref = jnp.maximum(xf @ bf(raw["feat_w"]).T + raw["feat_b"], 0.0)
    feats_bf = bf(feats_ref)
    ref_cls = feats_bf @ bf(raw["linear_w"]).T + raw["linear_b"]
    h_ref = jnp.maximum(feats_bf @ bf(raw["cls_w1"]).T + raw["cls_b1"], 0.0)
    ref_bin = bf(h_ref) @ bf(raw["cls_w2"]).T + raw["cls_b2"]

    tol = dict(atol=2e-3, rtol=2e-3)
    assert jnp.allclose(feats_k, feats_ref, **tol)
    assert jnp.allclose(logits_cls, ref_cls, **tol)
    assert jnp.allclose(logits_bin, ref_bin, **tol)
    assert jnp.allclose(lc, logits_cls, atol=1e-3, rtol=1e-3)     # packed == separate heads
    assert jnp.allclose(lb, logits_bin, atol=1e-3, rtol=1e-3)
    assert jnp.allclose(head_cls, ref_cls, atol=5e-3, rtol=5e-3)
    assert jnp.allclose(head_bin, ref_bin, atol=5e-3, rtol=5e-3)

    print("KERNEL_OK")
</pallas_src>

<mosaic_0001>
module attributes {stable_mosaic.version = 11 : i64} {
  func.func @_fused_cls_kernel(%arg0: i32, %arg1: i32, %arg2: memref<8x1024xbf16, #tpu.memory_space<vmem>>, %arg3: memref<1024x512xbf16, #tpu.memory_space<vmem>>, %arg4: memref<1x512xf32, #tpu.memory_space<vmem>>, %arg5: memref<512x128xbf16, #tpu.memory_space<vmem>>, %arg6: memref<1x128xf32, #tpu.memory_space<vmem>>, %arg7: memref<8x128xf32, #tpu.memory_space<vmem>>, %arg8: memref<8x512xf32, #tpu.memory_space<vmem>>) attributes {dimension_semantics = [#tpu.dimension_semantics<parallel>, #tpu.dimension_semantics<arbitrary>], iteration_bounds = array<i64: 1, 1>, scalar_prefetch = 0 : i64, scratch_operands = 1 : i64, tpu.core_type = #tpu.core_type<tc>, window_params = [{transform_indices = @transform_0, window_bounds = array<i64: 8, 1024>}, {transform_indices = @transform_1, window_bounds = array<i64: 1024, 512>}, {pipeline_mode = #tpu.pipeline_mode<synchronous>, transform_indices = @transform_2, window_bounds = array<i64: 1, 512>}, {pipeline_mode = #tpu.pipeline_mode<synchronous>, transform_indices = @transform_3, window_bounds = array<i64: 512, 128>}, {pipeline_mode = #tpu.pipeline_mode<synchronous>, transform_indices = @transform_4, window_bounds = array<i64: 1, 128>}, {transform_indices = @transform_5, window_bounds = array<i64: 8, 128>}]} {
    %c0_i32 = arith.constant 0 : i32
    %0 = arith.cmpi eq, %arg1, %c0_i32 : i32
    %1 = arith.extui %0 : i1 to i32
    %c0_i32_0 = arith.constant 0 : i32
    %2 = arith.cmpi ne, %1, %c0_i32_0 : i32
    scf.if %2 {
      %cst_10 = arith.constant 0.000000e+00 : f32
      %12 = vector.broadcast %cst_10 : f32 to vector<8x512xf32>
      %c0_11 = arith.constant 0 : index
      %c0_12 = arith.constant 0 : index
      %13 = vector.load %arg8[%c0_11, %c0_12] : memref<8x512xf32, #tpu.memory_space<vmem>>, vector<8x512xf32>
      tpu.vector_store %arg8[%c0_11, %c0_12], %12 {strides = array<i32>} : memref<8x512xf32, #tpu.memory_space<vmem>>, vector<8x512xf32>,
    } else {
    }
    %c0 = arith.constant 0 : index
    %c0_1 = arith.constant 0 : index
    %3 = vector.load %arg8[%c0, %c0_1] : memref<8x512xf32, #tpu.memory_space<vmem>>, vector<8x512xf32>
    %c0_2 = arith.constant 0 : index
    %c0_3 = arith.constant 0 : index
    %4 = vector.load %arg2[%c0_2, %c0_3] : memref<8x1024xbf16, #tpu.memory_space<vmem>>, vector<8x1024xbf16>
    %c0_4 = arith.constant 0 : index
    %c0_5 = arith.constant 0 : index
    %5 = vector.load %arg3[%c0_4, %c0_5] : memref<1024x512xbf16, #tpu.memory_space<vmem>>, vector<1024x512xbf16>
    %cst = arith.constant dense<0.000000e+00> : vector<8x512xf32>
    %6 = tpu.matmul %4, %5, %cst {dimension_numbers = #tpu.dot_dimension_numbers<[1], [0], [0], [1], [0, 0, 1, 1], [], []>} : vector<8x1024xbf16>, vector<1024x512xbf16>, vector<8x512xf32> -> vector<8x512xf32>
    %7 = arith.addf %3, %6 : vector<8x512xf32>
    %c0_6 = arith.constant 0 : index
    %c0_7 = arith.constant 0 : index
    %8 = vector.load %arg8[%c0_6, %c0_7] : memref<8x512xf32, #tpu.memory_space<vmem>>, vector<8x512xf32>
    tpu.vector_store %arg8[%c0_6, %c0_7], %7 {strides = array<i32>} : memref<8x512xf32, #tpu.memory_space<vmem>>, vector<8x512xf32>,
    %c0_i32_8 = arith.constant 0 : i32
    %9 = arith.cmpi eq, %arg1, %c0_i32_8 : i32
    %10 = arith.extui %9 : i1 to i32
    %c0_i32_9 = arith.constant 0 : i32
    %11 = arith.cmpi ne, %10, %c0_i32_9 : i32
    scf.if %11 {
      %c0_10 = arith.constant 0 : index
      %c0_11 = arith.constant 0 : index
      %12 = vector.load %arg8[%c0_10, %c0_11] : memref<8x512xf32, #tpu.memory_space<vmem>>, vector<8x512xf32>
      %c0_12 = arith.constant 0 : index
      %c0_13 = arith.constant 0 : index
      %13 = vector.load %arg4[%c0_12, %c0_13] : memref<1x512xf32, #tpu.memory_space<vmem>>, vector<1x512xf32>
      %14 = vector.broadcast %13 : vector<1x512xf32> to vector<8x512xf32>
      %15 = arith.addf %12, %14 : vector<8x512xf32>
      %cst_14 = arith.constant 0.000000e+00 : f32
      %16 = vector.broadcast %cst_14 : f32 to vector<8x512xf32>
      %17 = arith.maximumf %15, %16 : vector<8x512xf32>
      %18 = arith.truncf %17 : vector<8x512xf32> to vector<8x512xbf16>
      %c0_15 = arith.constant 0 : index
      %c0_16 = arith.constant 0 : index
      %19 = vector.load %arg5[%c0_15, %c0_16] : memref<512x128xbf16, #tpu.memory_space<vmem>>, vector<512x128xbf16>
      %cst_17 = arith.constant dense<0.000000e+00> : vector<8x128xf32>
      %20 = tpu.matmul %18, %19, %cst_17 {dimension_numbers = #tpu.dot_dimension_numbers<[1], [0], [0], [1], [0, 0, 1, 1], [], []>} : vector<8x512xbf16>, vector<512x128xbf16>, vector<8x128xf32> -> vector<8x128xf32>
      %c0_18 = arith.constant 0 : index
      %c0_19 = arith.constant 0 : index
      %21 = vector.load %arg6[%c0_18, %c0_19] : memref<1x128xf32, #tpu.memory_space<vmem>>, vector<1x128xf32>
      %22 = vector.broadcast %21 : vector<1x128xf32> to vector<8x128xf32>
      %23 = arith.addf %20, %22 : vector<8x128xf32>
      %c0_20 = arith.constant 0 : index
      %c0_21 = arith.constant 0 : index
      %24 = vector.load %arg7[%c0_20, %c0_21] : memref<8x128xf32, #tpu.memory_space<vmem>>, vector<8x128xf32>
      tpu.vector_store %arg7[%c0_20, %c0_21], %23 {strides = array<i32>} : memref<8x128xf32, #tpu.memory_space<vmem>>, vector<8x128xf32>,
    } else {
    }
    return
  }
  func.func @transform_0(%arg0: i32, %arg1: i32) -> (i32, i32) {
    %c0_i32 = arith.constant 0 : i32
    return %arg0, %arg1 : i32, i32
  }
  func.func @transform_1(%arg0: i32, %arg1: i32) -> (i32, i32) {
    %c0_i32 = arith.constant 0 : i32
    %c0_i32_0 = arith.constant 0 : i32
    return %arg1, %c0_i32 : i32, i32
  }
  func.func @transform_2(%arg0: i32, %arg1: i32) -> (i32, i32) {
    %c0_i32 = arith.constant 0 : i32
    %c0_i32_0 = arith.constant 0 : i32
    %c0_i32_1 = arith.constant 0 : i32
    return %c0_i32, %c0_i32_0 : i32, i32
  }
  func.func @transform_3(%arg0: i32, %arg1: i32) -> (i32, i32) {
    %c0_i32 = arith.constant 0 : i32
    %c0_i32_0 = arith.constant 0 : i32
    %c0_i32_1 = arith.constant 0 : i32
    return %c0_i32, %c0_i32_0 : i32, i32
  }
  func.func @transform_4(%arg0: i32, %arg1: i32) -> (i32, i32) {
    %c0_i32 = arith.constant 0 : i32
    %c0_i32_0 = arith.constant 0 : i32
    %c0_i32_1 = arith.constant 0 : i32
    return %c0_i32, %c0_i32_0 : i32, i32
  }
  func.func @transform_5(%arg0: i32, %arg1: i32) -> (i32, i32) {
    %c0_i32 = arith.constant 0 : i32
    %c0_i32_0 = arith.constant 0 : i32
    return %arg0, %c0_i32 : i32, i32
  }
}

</mosaic_0001>

<bundles_post_ra>
// kernel: tshd_forward.1
= control target key start
LH: loop header
LB: loop body
LE: loop exit
PB: predicated region body
PF: predicated region fallthrough
CT: control target
= control target key end

     0   :  { %10 = vsyncpa [#allocation4], 0  ;;  %s3131_s18 = smov [#allocation3]   ;;  %s3331_s0 = inlined_call_operand.vmem [shape: bf16[8,1024], index: 0, kind: input, shape index: {}]   ;;  %s3332_s1 = inlined_call_operand.hbm [shape: bf16[1024,512], index: 1, kind: input, shape index: {}]   ;;  %s3333_s2 = inlined_call_operand.vmem [shape: f32[1,512], index: 2, kind: input, shape index: {}]   ;;  %s3334_s3 = inlined_call_operand.vmem [shape: bf16[512,128], index: 3, kind: input, shape index: {}]   ;;  %s3335_s4 = inlined_call_operand.vmem [shape: f32[1,128], index: 4, kind: input, shape index: {}]   ;;  %s3336_s5 = inlined_call_operand.vmem [shape: f32[8,128], index: 5, kind: output, shape index: {}]  }
   0x1   :  { %s18_s19 = sshll.u32 %s3131_s18, 4  ;;  %s19_s19 = int_to_ptr.vmem [resolvable:$true] %s18_s19 }
   0x2   :  { %s3117_s20 = scalar_lea.vmem %s19_s19, 32768  ;;  %p3122_p1 = scmp.lt.s32.totalorder %s19_s19, %s19_s19 }
   0x3   :  { %p3118_p0 = scmp.ne.s32.totalorder %s19_s19, %s3117_s20  ;;  %p3123_p2 = scmp.lt.s32.totalorder %s3117_s20, %s3117_s20 }
   0x5   :  { %p3124_p3 = por %p3123_p2, %p3122_p1 }
   0x7   :  { %p3125_p4 = pnand %p3124_p3, %p3118_p0 }
   0x9   :  { %3128 = shalt.err (!%p3125_p4)
}
   0xa   :  { %s3132_s21 = smov 256   ;;  %s3133_s22 = smov 16  }
   0xb   :  { %24 = dma.hbm_to_vmem [thread:$0]  %s3332_s1, 32768, %s19_s19, [#allocation4], %s3132_s21, %s3132_s21, %s3133_s22  }
   0xc   :  { %3129 = dma.done.wait [#allocation4], 32768  }
   0xd   :  { %3130 = vsyncadd [#allocation4], 4294934528  ;;  %v2685_v0 = vld [vmem:[#allocation3 + $0xe4] ss:$16 sps:$4 sm:$0xff]   ;;  %v2689_v2 = vld [vmem:[#allocation3 + $0xe0] ss:$16 sps:$4 sm:$0xff]  }
   0xe   :  { %v2687_v1 = vld [vmem:[#allocation3 + $0x2e4] ss:$16 sps:$4 sm:$0xff]   ;;  %1615 = vmatprep.subr.bf16.mxu0 %v2685_v0  ;;  %v2690_v3 = vld [vmem:[#allocation3 + $0x2e0] ss:$16 sps:$4 sm:$0xff]   ;;  %v48_v48 = vld [vmem:[%s3331_s0 + $0x8] sm:$0xff] }
   0xf   :  { %1656 = vmatprep.subr.bf16.mxu1 %v2687_v1  ;;  %v2691_v4 = vld [vmem:[#allocation3 + $0xc4] ss:$16 sps:$4 sm:$0xff]   ;;  %1616 = vmatpush1.bf16.msra.mxu0 %v2689_v2  ;;  %v2695_v6 = vld [vmem:[#allocation3 + $0xc0] ss:$16 sps:$4 sm:$0xff]   ;;  %v3175_v51 = vcombine.high %v48_v48, %v48_v48 }
  0x10   :  { %1657 = vmatpush1.bf16.msra.mxu1 %v2690_v3  ;;  %v2693_v5 = vld [vmem:[#allocation3 + $0x2c4] ss:$16 sps:$4 sm:$0xff]   ;;  %1617 = vmatprep.subr.bf16.mxu0 %v2691_v4  ;;  %v2696_v7 = vld [vmem:[#allocation3 + $0x2c0] ss:$16 sps:$4 sm:$0xff]  }
  0x11   :  { %1658 = vmatprep.subr.bf16.mxu1 %v2693_v5  ;;  %v2697_v8 = vld [vmem:[#allocation3 + $0xa4] ss:$16 sps:$4 sm:$0xff]   ;;  %v2701_v10 = vld [vmem:[#allocation3 + $0xa0] ss:$16 sps:$4 sm:$0xff]   ;;  %1688 = vmatprep.mubr.bf16.mxu1 %v3175_v51 }
  0x12   :  { %v2699_v9 = vld [vmem:[#allocation3 + $0x2a4] ss:$16 sps:$4 sm:$0xff]   ;;  %v2702_v11 = vld [vmem:[#allocation3 + $0x2a0] ss:$16 sps:$4 sm:$0xff]  }
  0x13   :  { %1618 = vmatpush1.bf16.msra.mxu0 %v2695_v6  ;;  %v2703_v12 = vld [vmem:[#allocation3 + $0x84] ss:$16 sps:$4 sm:$0xff]   ;;  %v2707_v14 = vld [vmem:[#allocation3 + $0x80] ss:$16 sps:$4 sm:$0xff]  }
  0x14   :  { %1659 = vmatpush1.bf16.msra.mxu1 %v2696_v7  ;;  %1619 = vmatprep.subr.bf16.mxu0 %v2697_v8  ;;  %v2705_v13 = vld [vmem:[#allocation3 + $0x284] ss:$16 sps:$4 sm:$0xff]   ;;  %v2708_v15 = vld [vmem:[#allocation3 + $0x280] ss:$16 sps:$4 sm:$0xff]   ;;  %v3181_v7 = vcombine.low %v48_v48, %v48_v48 }
  0x15   :  { %1660 = vmatprep.subr.bf16.mxu1 %v2699_v9  ;;  %v2709_v16 = vld [vmem:[#allocation3 + $0x64] ss:$16 sps:$4 sm:$0xff]   ;;  %v2713_v18 = vld [vmem:[#allocation3 + $0x60] ss:$16 sps:$4 sm:$0xff]  }
  0x16   :  { %v2711_v17 = vld [vmem:[#allocation3 + $0x264] ss:$16 sps:$4 sm:$0xff]   ;;  %v2714_v19 = vld [vmem:[#allocation3 + $0x260] ss:$16 sps:$4 sm:$0xff]  }
  0x17   :  { %1620 = vmatpush1.bf16.msra.mxu0 %v2701_v10  ;;  %v2715_v20 = vld [vmem:[#allocation3 + $0x44] ss:$16 sps:$4 sm:$0xff]   ;;  %v2719_v22 = vld [vmem:[#allocation3 + $0x40] ss:$16 sps:$4 sm:$0xff]  }
  0x18   :  { %1661 = vmatpush1.bf16.msra.mxu1 %v2702_v11  ;;  %1621 = vmatprep.subr.bf16.mxu0 %v2703_v12  ;;  %v2717_v21 = vld [vmem:[#allocation3 + $0x244] ss:$16 sps:$4 sm:$0xff]   ;;  %v2720_v23 = vld [vmem:[#allocation3 + $0x240] ss:$16 sps:$4 sm:$0xff]  }
  0x19   :  { %1662 = vmatprep.subr.bf16.mxu1 %v2705_v13  ;;  %v2721_v24 = vld [vmem:[#allocation3 + $0x24] ss:$16 sps:$4 sm:$0xff]   ;;  %v2725_v26 = vld [vmem:[#allocation3 + $0x20] ss:$16 sps:$4 sm:$0xff]  }
  0x1a   :  { %v2723_v25 = vld [vmem:[#allocation3 + $0x224] ss:$16 sps:$4 sm:$0xff]   ;;  %v2726_v27 = vld [vmem:[#allocation3 + $0x220] ss:$16 sps:$4 sm:$0xff]  }
  0x1b   :  { %1622 = vmatpush1.bf16.msra.mxu0 %v2707_v14  ;;  %v2727_v28 = vld [vmem:[#allocation3 + $0x4] ss:$16 sps:$4 sm:$0xff]   ;;  %v2731_v30 = vld [vmem:[#allocation3] ss:$16 sps:$4 sm:$0xff]  }
  0x1c   :  { %1663 = vmatpush1.bf16.msra.mxu1 %v2708_v15  ;;  %1623 = vmatprep.subr.bf16.mxu0 %v2709_v16  ;;  %v2729_v29 = vld [vmem:[#allocation3 + $0x204] ss:$16 sps:$4 sm:$0xff]   ;;  %v2732_v31 = vld [vmem:[#allocation3 + $0x200] ss:$16 sps:$4 sm:$0xff]  }
  0x1d   :  { %1664 = vmatprep.subr.bf16.mxu1 %v2711_v17  ;;  %v2733_v32 = vld [vmem:[#allocation3 + $0x1e4] ss:$16 sps:$4 sm:$0xff]   ;;  %v2737_v34 = vld [vmem:[#allocation3 + $0x1e0] ss:$16 sps:$4 sm:$0xff]  }
  0x1e   :  { %v2735_v33 = vld [vmem:[#allocation3 + $0x3e4] ss:$16 sps:$4 sm:$0xff]   ;;  %v2738_v35 = vld [vmem:[#allocation3 + $0x3e0] ss:$16 sps:$4 sm:$0xff]  }
  0x1f   :  { %1624 = vmatpush1.bf16.msra.mxu0 %v2713_v18  ;;  %v2739_v36 = vld [vmem:[#allocation3 + $0x1c4] ss:$16 sps:$4 sm:$0xff]   ;;  %v2743_v38 = vld [vmem:[#allocation3 + $0x1c0] ss:$16 sps:$4 sm:$0xff]  }
  0x20   :  { %1665 = vmatpush1.bf16.msra.mxu1 %v2714_v19  ;;  %1625 = vmatprep.subr.bf16.mxu0 %v2715_v20  ;;  %v2741_v37 = vld [vmem:[#allocation3 + $0x3c4] ss:$16 sps:$4 sm:$0xff]   ;;  %v2744_v39 = vld [vmem:[#allocation3 + $0x3c0] ss:$16 sps:$4 sm:$0xff]  }
  0x21   :  { %1666 = vmatprep.subr.bf16.mxu1 %v2717_v21  ;;  %v2745_v40 = vld [vmem:[#allocation3 + $0x1a4] ss:$16 sps:$4 sm:$0xff]   ;;  %v2749_v42 = vld [vmem:[#allocation3 + $0x1a0] ss:$16 sps:$4 sm:$0xff]  }
  0x22   :  { %v2747_v41 = vld [vmem:[#allocation3 + $0x3a4] ss:$16 sps:$4 sm:$0xff]   ;;  %v2750_v43 = vld [vmem:[#allocation3 + $0x3a0] ss:$16 sps:$4 sm:$0xff]  }
  0x23   :  { %1626 = vmatpush1.bf16.msra.mxu0 %v2719_v22  ;;  %v2751_v44 = vld [vmem:[#allocation3 + $0x184] ss:$16 sps:$4 sm:$0xff]   ;;  %v2755_v49 = vld [vmem:[#allocation3 + $0x180] ss:$16 sps:$4 sm:$0xff]  }
  0x24   :  { %1667 = vmatpush1.bf16.msra.mxu1 %v2720_v23  ;;  %1627 = vmatprep.subr.bf16.mxu0 %v2721_v24  ;;  %v2753_v45 = vld [vmem:[#allocation3 + $0x384] ss:$16 sps:$4 sm:$0xff]   ;;  %v2756_v50 = vld [vmem:[#allocation3 + $0x380] ss:$16 sps:$4 sm:$0xff]  }
  0x25   :  { %1668 = vmatprep.subr.bf16.mxu1 %v2723_v25  ;;  %v47_v46 = vld [vmem:[%s3331_s0] sm:$0xff] }
  0x26   :  { %v3170_v47 = vcombine.high %v47_v46, %v47_v46  ;;  %v2757_v52 = vld [vmem:[#allocation3 + $0x164] ss:$16 sps:$4 sm:$0xff]   ;;  %v2761_v54 = vld [vmem:[#allocation3 + $0x160] ss:$16 sps:$4 sm:$0xff]   ;;  %v3179_v6 = vcombine.low %v47_v46, %v47_v46 }
  0x27   :  { %1628 = vmatpush1.bf16.msra.mxu0 %v2725_v26  ;;  %v2759_v53 = vld [vmem:[#allocation3 + $0x364] ss:$16 sps:$4 sm:$0xff]   ;;  %v2762_v55 = vld [vmem:[#allocation3 + $0x360] ss:$16 sps:$4 sm:$0xff]  }
  0x28   :  { %1669 = vmatpush1.bf16.msra.mxu1 %v2726_v27  ;;  %1629 = vmatprep.subr.bf16.mxu0 %v2727_v28  ;;  %v2763_v56 = vld [vmem:[#allocation3 + $0x144] ss:$16 sps:$4 sm:$0xff]   ;;  %v2767_v58 = vld [vmem:[#allocation3 + $0x140] ss:$16 sps:$4 sm:$0xff]  }
  0x29   :  { %1670 = vmatprep.subr.bf16.mxu1 %v2729_v29  ;;  %1647 = vmatprep.mubr.bf16.mxu0 %v3170_v47  ;;  %v2765_v57 = vld [vmem:[#allocation3 + $0x344] ss:$16 sps:$4 sm:$0xff]   ;;  %v2768_v59 = vld [vmem:[#allocation3 + $0x340] ss:$16 sps:$4 sm:$0xff]  }
  0x2a   :  { %v2769_v60 = vld [vmem:[#allocation3 + $0x124] ss:$16 sps:$4 sm:$0xff]   ;;  %v2773_v62 = vld [vmem:[#allocation3 + $0x120] ss:$16 sps:$4 sm:$0xff]  }
  0x2b   :  { %1630 = vmatpush1.bf16.msra.mxu0 %v2731_v30  ;;  %v2771_v61 = vld [vmem:[#allocation3 + $0x324] ss:$16 sps:$4 sm:$0xff]   ;;  %v2774_v63 = vld [vmem:[#allocation3 + $0x320] ss:$16 sps:$4 sm:$0xff]  }
  0x2c   :  { %1671 = vmatpush1.bf16.msra.mxu1 %v2732_v31  ;;  %1631 = vmatprep.subr.bf16.mxu0 %v2733_v32  ;;  %v2775_v0 = vld [vmem:[#allocation3 + $0x104] ss:$16 sps:$4 sm:$0xff]   ;;  %v2779_v2 = vld [vmem:[#allocation3 + $0x100] ss:$16 sps:$4 sm:$0xff]  }
  0x2d   :  { %1672 = vmatprep.subr.bf16.mxu1 %v2735_v33  ;;  %v2777_v1 = vld [vmem:[#allocation3 + $0x304] ss:$16 sps:$4 sm:$0xff]   ;;  %v2780_v3 = vld [vmem:[#allocation3 + $0x300] ss:$16 sps:$4 sm:$0xff]   ;;  %v3193_v33 = vld [vmem:[%s3331_s0 + $0x18] sm:$0xff] }
  0x2e   :  { %v2787_v4 = vld [vmem:[#allocation3 + $0x4e4] ss:$16 sps:$4 sm:$0xff]   ;;  %v2785_v8 = vld [vmem:[#allocation3 + $0x4e0] ss:$16 sps:$4 sm:$0xff]  }
  0x2f   :  { %1632 = vmatpush2.bf16.msra.mxu0 %v2737_v34  ;;  %v2790_v5 = vld [vmem:[#allocation3 + $0x6e4] ss:$16 sps:$4 sm:$0xff]   ;;  %v2788_v9 = vld [vmem:[#allocation3 + $0x6e0] ss:$16 sps:$4 sm:$0xff]  }
  0x30   :  { %1673 = vmatpush2.bf16.msra.mxu1 %v2738_v35  ;;  %1633 = vmatprep.subr.bf16.mxu0 %v2739_v36  ;;  %v2793_v10 = vld [vmem:[#allocation3 + $0x4c4] ss:$16 sps:$4 sm:$0xff]   ;;  %v2791_v12 = vld [vmem:[#allocation3 + $0x4c0] ss:$16 sps:$4 sm:$0xff]  }
  0x31   :  { %1674 = vmatprep.subr.bf16.mxu1 %v2741_v37  ;;  %v2796_v11 = vld [vmem:[#allocation3 + $0x6c4] ss:$16 sps:$4 sm:$0xff]   ;;  %v2794_v13 = vld [vmem:[#allocation3 + $0x6c0] ss:$16 sps:$4 sm:$0xff]   ;;  %v3201_v37 = vcombine.high %v3193_v33, %v3193_v33 }
  0x32   :  { %v2799_v14 = vld [vmem:[#allocation3 + $0x4a4] ss:$16 sps:$4 sm:$0xff]   ;;  %v2797_v16 = vld [vmem:[#allocation3 + $0x4a0] ss:$16 sps:$4 sm:$0xff]  }
  0x33   :  { %1634 = vmatpush2.bf16.msra.mxu0 %v2743_v38  ;;  %v2802_v15 = vld [vmem:[#allocation3 + $0x6a4] ss:$16 sps:$4 sm:$0xff]   ;;  %v2800_v17 = vld [vmem:[#allocation3 + $0x6a0] ss:$16 sps:$4 sm:$0xff]  }
  0x34   :  { %1675 = vmatpush2.bf16.msra.mxu1 %v2744_v39  ;;  %1635 = vmatprep.subr.bf16.mxu0 %v2745_v40  ;;  %v2805_v18 = vld [vmem:[#allocation3 + $0x484] ss:$16 sps:$4 sm:$0xff]   ;;  %v2803_v20 = vld [vmem:[#allocation3 + $0x480] ss:$16 sps:$4 sm:$0xff]  }
  0x35   :  { %1676 = vmatprep.subr.bf16.mxu1 %v2747_v41  ;;  %v2808_v19 = vld [vmem:[#allocation3 + $0x684] ss:$16 sps:$4 sm:$0xff]   ;;  %v2806_v21 = vld [vmem:[#allocation3 + $0x680] ss:$16 sps:$4 sm:$0xff]  }
  0x36   :  { %v2811_v22 = vld [vmem:[#allocation3 + $0x464] ss:$16 sps:$4 sm:$0xff]   ;;  %v2809_v24 = vld [vmem:[#allocation3 + $0x460] ss:$16 sps:$4 sm:$0xff]  }
  0x37   :  { %1636 = vmatpush2.bf16.msra.mxu0 %v2749_v42  ;;  %v2814_v23 = vld [vmem:[#allocation3 + $0x664] ss:$16 sps:$4 sm:$0xff]   ;;  %v2812_v25 = vld [vmem:[#allocation3 + $0x660] ss:$16 sps:$4 sm:$0xff]  }
  0x38   :  { %1677 = vmatpush2.bf16.msra.mxu1 %v2750_v43  ;;  %1637 = vmatprep.subr.bf16.mxu0 %v2751_v44  ;;  %v2817_v26 = vld [vmem:[#allocation3 + $0x444] ss:$16 sps:$4 sm:$0xff]   ;;  %v2815_v28 = vld [vmem:[#allocation3 + $0x440] ss:$16 sps:$4 sm:$0xff]  }
  0x39   :  { %1678 = vmatprep.subr.bf16.mxu1 %v2753_v45  ;;  %v2820_v27 = vld [vmem:[#allocation3 + $0x644] ss:$16 sps:$4 sm:$0xff]   ;;  %v2818_v29 = vld [vmem:[#allocation3 + $0x640] ss:$16 sps:$4 sm:$0xff]  }
  0x3a   :  { %v2823_v30 = vld [vmem:[#allocation3 + $0x424] ss:$16 sps:$4 sm:$0xff]   ;;  %v2821_v34 = vld [vmem:[#allocation3 + $0x420] ss:$16 sps:$4 sm:$0xff]  }
  0x3b   :  { %1638 = vmatpush2.bf16.msra.mxu0 %v2755_v49  ;;  %v2826_v31 = vld [vmem:[#allocation3 + $0x624] ss:$16 sps:$4 sm:$0xff]   ;;  %v2824_v35 = vld [vmem:[#allocation3 + $0x620] ss:$16 sps:$4 sm:$0xff]  }
  0x3c   :  { %1679 = vmatpush2.bf16.msra.mxu1 %v2756_v50  ;;  %1639 = vmatprep.subr.bf16.mxu0 %v2757_v52  ;;  %v3188_v32 = vld [vmem:[%s3331_s0 + $0x10] sm:$0xff] }
  0x3d   :  { %1680 = vmatprep.subr.bf16.mxu1 %v2759_v53  ;;  %v3197_v36 = vcombine.high %v3188_v32, %v3188_v32  ;;  %v2829_v38 = vld [vmem:[#allocation3 + $0x404] ss:$16 sps:$4 sm:$0xff]   ;;  %v2827_v40 = vld [vmem:[#allocation3 + $0x400] ss:$16 sps:$4 sm:$0xff]  }
  0x3e   :  { %v2832_v39 = vld [vmem:[#allocation3 + $0x604] ss:$16 sps:$4 sm:$0xff]   ;;  %v2830_v41 = vld [vmem:[#allocation3 + $0x600] ss:$16 sps:$4 sm:$0xff]  }
  0x3f   :  { %1640 = vmatpush2.bf16.msra.mxu0 %v2761_v54  ;;  %v2835_v42 = vld [vmem:[#allocation3 + $0x5e4] ss:$16 sps:$4 sm:$0xff]   ;;  %v2833_v44 = vld [vmem:[#allocation3 + $0x5e0] ss:$16 sps:$4 sm:$0xff]  }
  0x40   :  { %1681 = vmatpush2.bf16.msra.mxu1 %v2762_v55  ;;  %1641 = vmatprep.subr.bf16.mxu0 %v2763_v56  ;;  %v2838_v43 = vld [vmem:[#allocation3 + $0x7e4] ss:$16 sps:$4 sm:$0xff]   ;;  %v2836_v45 = vld [vmem:[#allocation3 + $0x7e0] ss:$16 sps:$4 sm:$0xff]  }
  0x41   :  { %1682 = vmatprep.subr.bf16.mxu1 %v2765_v57  ;;  %v2841_v46 = vld [vmem:[#allocation3 + $0x5c4] ss:$16 sps:$4 sm:$0xff]   ;;  %v2839_v49 = vld [vmem:[#allocation3 + $0x5c0] ss:$16 sps:$4 sm:$0xff]  }
  0x42   :  { %v2844_v48 = vld [vmem:[#allocation3 + $0x7c4] ss:$16 sps:$4 sm:$0xff]   ;;  %v2842_v50 = vld [vmem:[#allocation3 + $0x7c0] ss:$16 sps:$4 sm:$0xff]  }
  0x43   :  { %1642 = vmatpush2.bf16.msra.mxu0 %v2767_v58  ;;  %v2847_v52 = vld [vmem:[#allocation3 + $0x5a4] ss:$16 sps:$4 sm:$0xff]   ;;  %v2845_v54 = vld [vmem:[#allocation3 + $0x5a0] ss:$16 sps:$4 sm:$0xff]  }
  0x44   :  { %1683 = vmatpush2.bf16.msra.mxu1 %v2768_v59  ;;  %1643 = vmatprep.subr.bf16.mxu0 %v2769_v60  ;;  %v2850_v53 = vld [vmem:[#allocation3 + $0x7a4] ss:$16 sps:$4 sm:$0xff]   ;;  %v2848_v55 = vld [vmem:[#allocation3 + $0x7a0] ss:$16 sps:$4 sm:$0xff]  }
  0x45   :  { %1684 = vmatprep.subr.bf16.mxu1 %v2771_v61  ;;  %v2853_v56 = vld [vmem:[#allocation3 + $0x584] ss:$16 sps:$4 sm:$0xff]   ;;  %v2851_v58 = vld [vmem:[#allocation3 + $0x580] ss:$16 sps:$4 sm:$0xff]  }
  0x46   :  { %v2856_v57 = vld [vmem:[#allocation3 + $0x784] ss:$16 sps:$4 sm:$0xff]   ;;  %v2854_v59 = vld [vmem:[#allocation3 + $0x780] ss:$16 sps:$4 sm:$0xff]  }
  0x47   :  { %1644 = vmatpush2.bf16.msra.mxu0 %v2773_v62  ;;  %v2859_v60 = vld [vmem:[#allocation3 + $0x564] ss:$16 sps:$4 sm:$0xff]   ;;  %v2857_v62 = vld [vmem:[#allocation3 + $0x560] ss:$16 sps:$4 sm:$0xff]  }
  0x48   :  { %1685 = vmatpush2.bf16.msra.mxu1 %v2774_v63  ;;  %1645 = vmatprep.subr.bf16.mxu0 %v2775_v0  ;;  %v2862_v61 = vld [vmem:[#allocation3 + $0x764] ss:$16 sps:$4 sm:$0xff]   ;;  %v2860_v63 = vld [vmem:[#allocation3 + $0x760] ss:$16 sps:$4 sm:$0xff]  }
  0x49   :  { %1686 = vmatprep.subr.bf16.mxu1 %v2777_v1  ;;  %v2865_v0 = vld [vmem:[#allocation3 + $0x544] ss:$16 sps:$4 sm:$0xff]  }
  0x4a   :  { %v2868_v1 = vld [vmem:[#allocation3 + $0x744] ss:$16 sps:$4 sm:$0xff]  }
  0x4b   :  { %1646 = vmatpush2.bf16.msra.mxu0 %v2779_v2  ;;  %v2863_v2 = vld [vmem:[#allocation3 + $0x540] ss:$16 sps:$4 sm:$0xff]  }
  0x4c   :  { %1687 = vmatpush2.bf16.msra.mxu1 %v2780_v3  ;;  %1697 = vmatprep.subr.bf16.mxu0 %v2787_v4  ;;  %v2866_v3 = vld [vmem:[#allocation3 + $0x740] ss:$16 sps:$4 sm:$0xff]   ;;  %v2871_v4 = vld [vmem:[#allocation3 + $0x524] ss:$16 sps:$4 sm:$0xff]  }
  0x4d   :  { %1738 = vmatprep.subr.bf16.mxu1 %v2790_v5  ;;  %v2874_v5 = vld [vmem:[#allocation3 + $0x724] ss:$16 sps:$4 sm:$0xff]  }
  0x4e   :  { %1648 = vmatmul.mubr.bf16.vlgmr.msra.gmra.mxu0 %v3179_v6 }
  0x4f   :  { %1689 = vmatmul.mubr.bf16.vlgmr.msra.gmra.mxu1 %v3181_v7  ;;  %1698 = vmatpush1.bf16.msra.mxu0 %v2785_v8  ;;  %v2869_v8 = vld [vmem:[#allocation3 + $0x520] ss:$16 sps:$4 sm:$0xff]  }
  0x50   :  { %1739 = vmatpush1.bf16.msra.mxu1 %v2788_v9  ;;  %1699 = vmatprep.subr.bf16.mxu0 %v2793_v10  ;;  %v2872_v9 = vld [vmem:[#allocation3 + $0x720] ss:$16 sps:$4 sm:$0xff]   ;;  %v2877_v10 = vld [vmem:[#allocation3 + $0x504] ss:$16 sps:$4 sm:$0xff]  }
  0x51   :  { %1740 = vmatprep.subr.bf16.mxu1 %v2796_v11  ;;  %1729 = vmatprep.mubr.bf16.mxu0 %v3197_v36  ;;  %v2880_v11 = vld [vmem:[#allocation3 + $0x704] ss:$16 sps:$4 sm:$0xff]  }
  0x52   :  { %1770 = vmatprep.mubr.bf16.mxu1 %v3201_v37 }
  0x53   :  { %1700 = vmatpush1.bf16.msra.mxu0 %v2791_v12  ;;  %v2875_v12 = vld [vmem:[#allocation3 + $0x500] ss:$16 sps:$4 sm:$0xff]  }
  0x54   :  { %1741 = vmatpush1.bf16.msra.mxu1 %v2794_v13  ;;  %1701 = vmatprep.subr.bf16.mxu0 %v2799_v14  ;;  %v2878_v13 = vld [vmem:[#allocation3 + $0x700] ss:$16 sps:$4 sm:$0xff]   ;;  %v2887_v14 = vld [vmem:[#allocation3 + $0xec] ss:$16 sps:$4 sm:$0xff]  }
  0x55   :  { %1742 = vmatprep.subr.bf16.mxu1 %v2802_v15  ;;  %v2890_v15 = vld [vmem:[#allocation3 + $0x2ec] ss:$16 sps:$4 sm:$0xff]  }
  0x57   :  { %1702 = vmatpush1.bf16.msra.mxu0 %v2797_v16  ;;  %v3207_v16 = vcombine.low %v3188_v32, %v3188_v32  ;;  %v2911_v32 = vld [vmem:[#allocation3 + $0x6c] ss:$16 sps:$4 sm:$0xff]  }
  0x58   :  { %1743 = vmatpush1.bf16.msra.mxu1 %v2800_v17  ;;  %1703 = vmatprep.subr.bf16.mxu0 %v2805_v18  ;;  %v3211_v17 = vcombine.low %v3193_v33, %v3193_v33  ;;  %v2885_v18 = vld [vmem:[#allocation3 + $0xe8] ss:$16 sps:$4 sm:$0xff]   ;;  %v2914_v33 = vld [vmem:[#allocation3 + $0x26c] ss:$16 sps:$4 sm:$0xff]  }
  0x59   :  { %1744 = vmatprep.subr.bf16.mxu1 %v2808_v19  ;;  %v2888_v19 = vld [vmem:[#allocation3 + $0x2e8] ss:$16 sps:$4 sm:$0xff]  }
  0x5b   :  { %1704 = vmatpush1.bf16.msra.mxu0 %v2803_v20  ;;  %v2893_v20 = vld [vmem:[#allocation3 + $0xcc] ss:$16 sps:$4 sm:$0xff]  }
  0x5c   :  { %1745 = vmatpush1.bf16.msra.mxu1 %v2806_v21  ;;  %1705 = vmatprep.subr.bf16.mxu0 %v2811_v22  ;;  %v2896_v21 = vld [vmem:[#allocation3 + $0x2cc] ss:$16 sps:$4 sm:$0xff]   ;;  %v2891_v22 = vld [vmem:[#allocation3 + $0xc8] ss:$16 sps:$4 sm:$0xff]  }
  0x5d   :  { %1746 = vmatprep.subr.bf16.mxu1 %v2814_v23  ;;  %v2894_v23 = vld [vmem:[#allocation3 + $0x2c8] ss:$16 sps:$4 sm:$0xff]  }
  0x5f   :  { %1706 = vmatpush1.bf16.msra.mxu0 %v2809_v24  ;;  %v2899_v24 = vld [vmem:[#allocation3 + $0xac] ss:$16 sps:$4 sm:$0xff]  }
  0x60   :  { %1747 = vmatpush1.bf16.msra.mxu1 %v2812_v25  ;;  %1707 = vmatprep.subr.bf16.mxu0 %v2817_v26  ;;  %v2902_v25 = vld [vmem:[#allocation3 + $0x2ac] ss:$16 sps:$4 sm:$0xff]   ;;  %v2897_v26 = vld [vmem:[#allocation3 + $0xa8] ss:$16 sps:$4 sm:$0xff]  }
  0x61   :  { %1748 = vmatprep.subr.bf16.mxu1 %v2820_v27  ;;  %v2900_v27 = vld [vmem:[#allocation3 + $0x2a8] ss:$16 sps:$4 sm:$0xff]  }
  0x63   :  { %1708 = vmatpush1.bf16.msra.mxu0 %v2815_v28  ;;  %v2905_v28 = vld [vmem:[#allocation3 + $0x8c] ss:$16 sps:$4 sm:$0xff]  }
  0x64   :  { %1749 = vmatpush1.bf16.msra.mxu1 %v2818_v29  ;;  %1709 = vmatprep.subr.bf16.mxu0 %v2823_v30  ;;  %v2908_v29 = vld [vmem:[#allocation3 + $0x28c] ss:$16 sps:$4 sm:$0xff]   ;;  %v2903_v30 = vld [vmem:[#allocation3 + $0x88] ss:$16 sps:$4 sm:$0xff]  }
  0x65   :  { %1750 = vmatprep.subr.bf16.mxu1 %v2826_v31  ;;  %v2906_v31 = vld [vmem:[#allocation3 + $0x288] ss:$16 sps:$4 sm:$0xff]  }
  0x67   :  { %1710 = vmatpush1.bf16.msra.mxu0 %v2821_v34  ;;  %v2909_v34 = vld [vmem:[#allocation3 + $0x68] ss:$16 sps:$4 sm:$0xff]  }
  0x68   :  { %1751 = vmatpush1.bf16.msra.mxu1 %v2824_v35  ;;  %1711 = vmatprep.subr.bf16.mxu0 %v2829_v38  ;;  %v2920_v35 = vld [vmem:[#allocation3 + $0x24c] ss:$16 sps:$4 sm:$0xff]   ;;  %v2915_v38 = vld [vmem:[#allocation3 + $0x48] ss:$16 sps:$4 sm:$0xff]  }
  0x69   :  { %1752 = vmatprep.subr.bf16.mxu1 %v2832_v39  ;;  %v2918_v39 = vld [vmem:[#allocation3 + $0x248] ss:$16 sps:$4 sm:$0xff]  }
  0x6b   :  { %1712 = vmatpush1.bf16.msra.mxu0 %v2827_v40  ;;  %v2923_v40 = vld [vmem:[#allocation3 + $0x2c] ss:$16 sps:$4 sm:$0xff]  }
  0x6c   :  { %1753 = vmatpush1.bf16.msra.mxu1 %v2830_v41  ;;  %1713 = vmatprep.subr.bf16.mxu0 %v2835_v42  ;;  %v2926_v41 = vld [vmem:[#allocation3 + $0x22c] ss:$16 sps:$4 sm:$0xff]   ;;  %v2921_v42 = vld [vmem:[#allocation3 + $0x28] ss:$16 sps:$4 sm:$0xff]  }
  0x6d   :  { %1754 = vmatprep.subr.bf16.mxu1 %v2838_v43  ;;  %v2924_v43 = vld [vmem:[#allocation3 + $0x228] ss:$16 sps:$4 sm:$0xff]  }
  0x6f   :  { %1714 = vmatpush2.bf16.msra.mxu0 %v2833_v44  ;;  %v2929_v44 = vld [vmem:[#allocation3 + $0xc] ss:$16 sps:$4 sm:$0xff]  }
  0x70   :  { %1755 = vmatpush2.bf16.msra.mxu1 %v2836_v45  ;;  %1715 = vmatprep.subr.bf16.mxu0 %v2841_v46  ;;  %v2932_v45 = vld [vmem:[#allocation3 + $0x20c] ss:$16 sps:$4 sm:$0xff]   ;;  %v2927_v46 = vld [vmem:[#allocation3 + $0x8] ss:$16 sps:$4 sm:$0xff]  }
  0x71   :  { %1756 = vmatprep.subr.bf16.mxu1 %v2844_v48  ;;  %v2930_v48 = vld [vmem:[#allocation3 + $0x208] ss:$16 sps:$4 sm:$0xff]  }
  0x73   :  { %1716 = vmatpush2.bf16.msra.mxu0 %v2839_v49  ;;  %v2935_v49 = vld [vmem:[#allocation3 + $0x1ec] ss:$16 sps:$4 sm:$0xff]  }
  0x74   :  { %1757 = vmatpush2.bf16.msra.mxu1 %v2842_v50  ;;  %1717 = vmatprep.subr.bf16.mxu0 %v2847_v52  ;;  %v2938_v50 = vld [vmem:[#allocation3 + $0x3ec] ss:$16 sps:$4 sm:$0xff]   ;;  %v2933_v52 = vld [vmem:[#allocation3 + $0x1e8] ss:$16 sps:$4 sm:$0xff]  }
  0x75   :  { %1758 = vmatprep.subr.bf16.mxu1 %v2850_v53  ;;  %v2936_v53 = vld [vmem:[#allocation3 + $0x3e8] ss:$16 sps:$4 sm:$0xff]  }
  0x77   :  { %1718 = vmatpush2.bf16.msra.mxu0 %v2845_v54  ;;  %v2941_v54 = vld [vmem:[#allocation3 + $0x1cc] ss:$16 sps:$4 sm:$0xff]  }
  0x78   :  { %1759 = vmatpush2.bf16.msra.mxu1 %v2848_v55  ;;  %1719 = vmatprep.subr.bf16.mxu0 %v2853_v56  ;;  %v2944_v55 = vld [vmem:[#allocation3 + $0x3cc] ss:$16 sps:$4 sm:$0xff]   ;;  %v2939_v56 = vld [vmem:[#allocation3 + $0x1c8] ss:$16 sps:$4 sm:$0xff]  }
  0x79   :  { %1760 = vmatprep.subr.bf16.mxu1 %v2856_v57  ;;  %v2942_v57 = vld [vmem:[#allocation3 + $0x3c8] ss:$16 sps:$4 sm:$0xff]  }
  0x7b   :  { %1720 = vmatpush2.bf16.msra.mxu0 %v2851_v58  ;;  %v2947_v58 = vld [vmem:[#allocation3 + $0x1ac] ss:$16 sps:$4 sm:$0xff]  }
  0x7c   :  { %1761 = vmatpush2.bf16.msra.mxu1 %v2854_v59  ;;  %1721 = vmatprep.subr.bf16.mxu0 %v2859_v60  ;;  %v2950_v59 = vld [vmem:[#allocation3 + $0x3ac] ss:$16 sps:$4 sm:$0xff]   ;;  %v2945_v60 = vld [vmem:[#allocation3 + $0x1a8] ss:$16 sps:$4 sm:$0xff]  }
  0x7d   :  { %1762 = vmatprep.subr.bf16.mxu1 %v2862_v61  ;;  %v2948_v61 = vld [vmem:[#allocation3 + $0x3a8] ss:$16 sps:$4 sm:$0xff]  }
  0x7f   :  { %1722 = vmatpush2.bf16.msra.mxu0 %v2857_v62  ;;  %v2953_v62 = vld [vmem:[#allocation3 + $0x18c] ss:$16 sps:$4 sm:$0xff]  }
  0x80   :  { %1763 = vmatpush2.bf16.msra.mxu1 %v2860_v63  ;;  %1723 = vmatprep.subr.bf16.mxu0 %v2865_v0  ;;  %v2956_v63 = vld [vmem:[#allocation3 + $0x38c] ss:$16 sps:$4 sm:$0xff]   ;;  %v2951_v0 = vld [vmem:[#allocation3 + $0x188] ss:$16 sps:$4 sm:$0xff]  }
  0x81   :  { %1764 = vmatprep.subr.bf16.mxu1 %v2868_v1  ;;  %v2954_v1 = vld [vmem:[#allocation3 + $0x388] ss:$16 sps:$4 sm:$0xff]  }
  0x83   :  { %1724 = vmatpush2.bf16.msra.mxu0 %v2863_v2  ;;  %v2959_v2 = vld [vmem:[#allocation3 + $0x16c] ss:$16 sps:$4 sm:$0xff]  }
  0x84   :  { %1765 = vmatpush2.bf16.msra.mxu1 %v2866_v3  ;;  %1725 = vmatprep.subr.bf16.mxu0 %v2871_v4  ;;  %v2962_v3 = vld [vmem:[#allocation3 + $0x36c] ss:$16 sps:$4 sm:$0xff]   ;;  %v2957_v4 = vld [vmem:[#allocation3 + $0x168] ss:$16 sps:$4 sm:$0xff]  }
  0x85   :  { %1766 = vmatprep.subr.bf16.mxu1 %v2874_v5  ;;  %v2960_v5 = vld [vmem:[#allocation3 + $0x368] ss:$16 sps:$4 sm:$0xff]  }
  0x87   :  { %1726 = vmatpush2.bf16.msra.mxu0 %v2869_v8  ;;  %v2965_v8 = vld [vmem:[#allocation3 + $0x14c] ss:$16 sps:$4 sm:$0xff]  }
  0x88   :  { %1767 = vmatpush2.bf16.msra.mxu1 %v2872_v9  ;;  %1727 = vmatprep.subr.bf16.mxu0 %v2877_v10  ;;  %v2968_v9 = vld [vmem:[#allocation3 + $0x34c] ss:$16 sps:$4 sm:$0xff]   ;;  %v2963_v10 = vld [vmem:[#allocation3 + $0x148] ss:$16 sps:$4 sm:$0xff]  }
  0x89   :  { %1768 = vmatprep.subr.bf16.mxu1 %v2880_v11  ;;  %v2966_v11 = vld [vmem:[#allocation3 + $0x348] ss:$16 sps:$4 sm:$0xff]  }
  0x8b   :  { %1728 = vmatpush2.bf16.msra.mxu0 %v2875_v12  ;;  %v2971_v12 = vld [vmem:[#allocation3 + $0x12c] ss:$16 sps:$4 sm:$0xff]  }
  0x8c   :  { %1769 = vmatpush2.bf16.msra.mxu1 %v2878_v13  ;;  %1779 = vmatprep.subr.bf16.mxu0 %v2887_v14  ;;  %v2974_v13 = vld [vmem:[#allocation3 + $0x32c] ss:$16 sps:$4 sm:$0xff]   ;;  %v2969_v14 = vld [vmem:[#allocation3 + $0x128] ss:$16 sps:$4 sm:$0xff]  }
  0x8d   :  { %1820 = vmatprep.subr.bf16.mxu1 %v2890_v15  ;;  %v2972_v15 = vld [vmem:[#allocation3 + $0x328] ss:$16 sps:$4 sm:$0xff]  }
  0x8e   :  { %1730 = vmatmul.mubr.bf16.vlgmr.msra.gmra.mxu0 %v3207_v16 }
  0x8f   :  { %1771 = vmatmul.mubr.bf16.vlgmr.msra.gmra.mxu1 %v3211_v17  ;;  %1780 = vmatpush1.bf16.msra.mxu0 %v2885_v18  ;;  %v2977_v18 = vld [vmem:[#allocation3 + $0x10c] ss:$16 sps:$4 sm:$0xff]  }
  0x90   :  { %1821 = vmatpush1.bf16.msra.mxu1 %v2888_v19  ;;  %1781 = vmatprep.subr.bf16.mxu0 %v2893_v20  ;;  %v2980_v19 = vld [vmem:[#allocation3 + $0x30c] ss:$16 sps:$4 sm:$0xff]   ;;  %v2975_v20 = vld [vmem:[#allocation3 + $0x108] ss:$16 sps:$4 sm:$0xff]  }
  0x91   :  { %1822 = vmatprep.subr.bf16.mxu1 %v2896_v21  ;;  %1811 = vmatprep.mubr.bf16.mxu0 %v3170_v47  ;;  %v2912_v47 = vld [vmem:[#allocation3 + $0x268] ss:$16 sps:$4 sm:$0xff]  }
  0x92   :  { %1852 = vmatprep.mubr.bf16.mxu1 %v3175_v51  ;;  %v2917_v51 = vld [vmem:[#allocation3 + $0x4c] ss:$16 sps:$4 sm:$0xff]   ;;  %v2978_v21 = vld [vmem:[#allocation3 + $0x308] ss:$16 sps:$4 sm:$0xff]  }
  0x93   :  { %1782 = vmatpush1.bf16.msra.mxu0 %v2891_v22  ;;  %v2983_v22 = vld [vmem:[#allocation3 + $0x4ec] ss:$16 sps:$4 sm:$0xff]  }
  0x94   :  { %1823 = vmatpush1.bf16.msra.mxu1 %v2894_v23  ;;  %1783 = vmatprep.subr.bf16.mxu0 %v2899_v24  ;;  %v2986_v23 = vld [vmem:[#allocation3 + $0x6ec] ss:$16 sps:$4 sm:$0xff]   ;;  %v2981_v24 = vld [vmem:[#allocation3 + $0x4e8] ss:$16 sps:$4 sm:$0xff]  }
  0x95   :  { %1824 = vmatprep.subr.bf16.mxu1 %v2902_v25  ;;  %v2984_v25 = vld [vmem:[#allocation3 + $0x6e8] ss:$16 sps:$4 sm:$0xff]  }
  0x97   :  { %1784 = vmatpush1.bf16.msra.mxu0 %v2897_v26  ;;  %v2989_v26 = vld [vmem:[#allocation3 + $0x4cc] ss:$16 sps:$4 sm:$0xff]  }
  0x98   :  { %1825 = vmatpush1.bf16.msra.mxu1 %v2900_v27  ;;  %1785 = vmatprep.subr.bf16.mxu0 %v2905_v28  ;;  %v2992_v27 = vld [vmem:[#allocation3 + $0x6cc] ss:$16 sps:$4 sm:$0xff]   ;;  %v2987_v28 = vld [vmem:[#allocation3 + $0x4c8] ss:$16 sps:$4 sm:$0xff]  }
  0x99   :  { %1826 = vmatprep.subr.bf16.mxu1 %v2908_v29  ;;  %v2990_v29 = vld [vmem:[#allocation3 + $0x6c8] ss:$16 sps:$4 sm:$0xff]  }
  0x9b   :  { %1786 = vmatpush1.bf16.msra.mxu0 %v2903_v30  ;;  %v2995_v30 = vld [vmem:[#allocation3 + $0x4ac] ss:$16 sps:$4 sm:$0xff]  }
  0x9c   :  { %1827 = vmatpush1.bf16.msra.mxu1 %v2906_v31  ;;  %1787 = vmatprep.subr.bf16.mxu0 %v2911_v32  ;;  %v2998_v31 = vld [vmem:[#allocation3 + $0x6ac] ss:$16 sps:$4 sm:$0xff]   ;;  %v2993_v32 = vld [vmem:[#allocation3 + $0x4a8] ss:$16 sps:$4 sm:$0xff]  }
  0x9d   :  { %1828 = vmatprep.subr.bf16.mxu1 %v2914_v33  ;;  %v2996_v33 = vld [vmem:[#allocation3 + $0x6a8] ss:$16 sps:$4 sm:$0xff]  }
  0x9f   :  { %1788 = vmatpush1.bf16.msra.mxu0 %v2909_v34  ;;  %v3004_v34 = vld [vmem:[#allocation3 + $0x68c] ss:$16 sps:$4 sm:$0xff]  }
  0xa0   :  { %1829 = vmatpush1.bf16.msra.mxu1 %v2912_v47  ;;  %1789 = vmatprep.subr.bf16.mxu0 %v2917_v51  ;;  %v3002_v47 = vld [vmem:[#allocation3 + $0x688] ss:$16 sps:$4 sm:$0xff]   ;;  %v3007_v51 = vld [vmem:[#allocation3 + $0x46c] ss:$16 sps:$4 sm:$0xff]  }
  0xa1   :  { %1830 = vmatprep.subr.bf16.mxu1 %v2920_v35  ;;  %v3010_v35 = vld [vmem:[#allocation3 + $0x66c] ss:$16 sps:$4 sm:$0xff]  }
  0xa3   :  { %1790 = vmatpush1.bf16.msra.mxu0 %v2915_v38  ;;  %v3013_v38 = vld [vmem:[#allocation3 + $0x44c] ss:$16 sps:$4 sm:$0xff]  }
  0xa4   :  { %1831 = vmatpush1.bf16.msra.mxu1 %v2918_v39  ;;  %1791 = vmatprep.subr.bf16.mxu0 %v2923_v40  ;;  %v3016_v39 = vld [vmem:[#allocation3 + $0x64c] ss:$16 sps:$4 sm:$0xff]   ;;  %v3011_v40 = vld [vmem:[#allocation3 + $0x448] ss:$16 sps:$4 sm:$0xff]  }
  0xa5   :  { %1832 = vmatprep.subr.bf16.mxu1 %v2926_v41  ;;  %v3014_v41 = vld [vmem:[#allocation3 + $0x648] ss:$16 sps:$4 sm:$0xff]  }
  0xa7   :  { %1792 = vmatpush1.bf16.msra.mxu0 %v2921_v42  ;;  %v3019_v42 = vld [vmem:[#allocation3 + $0x42c] ss:$16 sps:$4 sm:$0xff]  }
  0xa8   :  { %1833 = vmatpush1.bf16.msra.mxu1 %v2924_v43  ;;  %1793 = vmatprep.subr.bf16.mxu0 %v2929_v44  ;;  %v3022_v43 = vld [vmem:[#allocation3 + $0x62c] ss:$16 sps:$4 sm:$0xff]   ;;  %v3017_v44 = vld [vmem:[#allocation3 + $0x428] ss:$16 sps:$4 sm:$0xff]  }
  0xa9   :  { %1834 = vmatprep.subr.bf16.mxu1 %v2932_v45  ;;  %v3020_v45 = vld [vmem:[#allocation3 + $0x628] ss:$16 sps:$4 sm:$0xff]  }
  0xab   :  { %1794 = vmatpush1.bf16.msra.mxu0 %v2927_v46  ;;  %v3025_v46 = vld [vmem:[#allocation3 + $0x40c] ss:$16 sps:$4 sm:$0xff]  }
  0xac   :  { %1835 = vmatpush1.bf16.msra.mxu1 %v2930_v48  ;;  %1795 = vmatprep.subr.bf16.mxu0 %v2935_v49  ;;  %v3028_v48 = vld [vmem:[#allocation3 + $0x60c] ss:$16 sps:$4 sm:$0xff]   ;;  %v3023_v49 = vld [vmem:[#allocation3 + $0x408] ss:$16 sps:$4 sm:$0xff]  }
  0xad   :  { %1836 = vmatprep.subr.bf16.mxu1 %v2938_v50  ;;  %v3026_v50 = vld [vmem:[#allocation3 + $0x608] ss:$16 sps:$4 sm:$0xff]  }
  0xaf   :  { %1796 = vmatpush2.bf16.msra.mxu0 %v2933_v52  ;;  %v3031_v52 = vld [vmem:[#allocation3 + $0x5ec] ss:$16 sps:$4 sm:$0xff]  }
  0xb0   :  { %1837 = vmatpush2.bf16.msra.mxu1 %v2936_v53  ;;  %1797 = vmatprep.subr.bf16.mxu0 %v2941_v54  ;;  %v3034_v53 = vld [vmem:[#allocation3 + $0x7ec] ss:$16 sps:$4 sm:$0xff]   ;;  %v3029_v54 = vld [vmem:[#allocation3 + $0x5e8] ss:$16 sps:$4 sm:$0xff]  }
  0xb1   :  { %1838 = vmatprep.subr.bf16.mxu1 %v2944_v55  ;;  %v3032_v55 = vld [vmem:[#allocation3 + $0x7e8] ss:$16 sps:$4 sm:$0xff]  }
  0xb3   :  { %1798 = vmatpush2.bf16.msra.mxu0 %v2939_v56  ;;  %v3037_v56 = vld [vmem:[#allocation3 + $0x5cc] ss:$16 sps:$4 sm:$0xff]  }
  0xb4   :  { %1839 = vmatpush2.bf16.msra.mxu1 %v2942_v57  ;;  %1799 = vmatprep.subr.bf16.mxu0 %v2947_v58  ;;  %v3040_v57 = vld [vmem:[#allocation3 + $0x7cc] ss:$16 sps:$4 sm:$0xff]   ;;  %v3035_v58 = vld [vmem:[#allocation3 + $0x5c8] ss:$16 sps:$4 sm:$0xff]  }
  0xb5   :  { %1840 = vmatprep.subr.bf16.mxu1 %v2950_v59  ;;  %v3038_v59 = vld [vmem:[#allocation3 + $0x7c8] ss:$16 sps:$4 sm:$0xff]  }
  0xb7   :  { %1800 = vmatpush2.bf16.msra.mxu0 %v2945_v60  ;;  %v3043_v60 = vld [vmem:[#allocation3 + $0x5ac] ss:$16 sps:$4 sm:$0xff]  }
  0xb8   :  { %1841 = vmatpush2.bf16.msra.mxu1 %v2948_v61  ;;  %1801 = vmatprep.subr.bf16.mxu0 %v2953_v62  ;;  %v3046_v61 = vld [vmem:[#allocation3 + $0x7ac] ss:$16 sps:$4 sm:$0xff]   ;;  %v3041_v62 = vld [vmem:[#allocation3 + $0x5a8] ss:$16 sps:$4 sm:$0xff]  }
  0xb9   :  { %1842 = vmatprep.subr.bf16.mxu1 %v2956_v63  ;;  %v3044_v63 = vld [vmem:[#allocation3 + $0x7a8] ss:$16 sps:$4 sm:$0xff]  }
  0xbb   :  { %1802 = vmatpush2.bf16.msra.mxu0 %v2951_v0  ;;  %v3049_v0 = vld [vmem:[#allocation3 + $0x58c] ss:$16 sps:$4 sm:$0xff]  }
  0xbc   :  { %1843 = vmatpush2.bf16.msra.mxu1 %v2954_v1  ;;  %1803 = vmatprep.subr.bf16.mxu0 %v2959_v2  ;;  %v3052_v1 = vld [vmem:[#allocation3 + $0x78c] ss:$16 sps:$4 sm:$0xff]   ;;  %v3047_v2 = vld [vmem:[#allocation3 + $0x588] ss:$16 sps:$4 sm:$0xff]  }
  0xbd   :  { %1844 = vmatprep.subr.bf16.mxu1 %v2962_v3  ;;  %v3050_v3 = vld [vmem:[#allocation3 + $0x788] ss:$16 sps:$4 sm:$0xff]  }
  0xbf   :  { %1804 = vmatpush2.bf16.msra.mxu0 %v2957_v4  ;;  %v3055_v4 = vld [vmem:[#allocation3 + $0x56c] ss:$16 sps:$4 sm:$0xff]  }
  0xc0   :  { %1845 = vmatpush2.bf16.msra.mxu1 %v2960_v5  ;;  %1805 = vmatprep.subr.bf16.mxu0 %v2965_v8  ;;  %v3058_v5 = vld [vmem:[#allocation3 + $0x76c] ss:$16 sps:$4 sm:$0xff]   ;;  %v3053_v8 = vld [vmem:[#allocation3 + $0x568] ss:$16 sps:$4 sm:$0xff]  }
  0xc1   :  { %1846 = vmatprep.subr.bf16.mxu1 %v2968_v9  ;;  %v3056_v9 = vld [vmem:[#allocation3 + $0x768] ss:$16 sps:$4 sm:$0xff]  }
  0xc3   :  { %1806 = vmatpush2.bf16.msra.mxu0 %v2963_v10  ;;  %v3061_v10 = vld [vmem:[#allocation3 + $0x54c] ss:$16 sps:$4 sm:$0xff]  }
  0xc4   :  { %1847 = vmatpush2.bf16.msra.mxu1 %v2966_v11  ;;  %1807 = vmatprep.subr.bf16.mxu0 %v2971_v12  ;;  %v3064_v11 = vld [vmem:[#allocation3 + $0x74c] ss:$16 sps:$4 sm:$0xff]   ;;  %v3059_v12 = vld [vmem:[#allocation3 + $0x548] ss:$16 sps:$4 sm:$0xff]  }
  0xc5   :  { %1848 = vmatprep.subr.bf16.mxu1 %v2974_v13  ;;  %v3062_v13 = vld [vmem:[#allocation3 + $0x748] ss:$16 sps:$4 sm:$0xff]  }
  0xc7   :  { %1808 = vmatpush2.bf16.msra.mxu0 %v2969_v14  ;;  %v3067_v14 = vld [vmem:[#allocation3 + $0x52c] ss:$16 sps:$4 sm:$0xff]  }
  0xc8   :  { %1849 = vmatpush2.bf16.msra.mxu1 %v2972_v15  ;;  %1809 = vmatprep.subr.bf16.mxu0 %v2977_v18  ;;  %v3070_v15 = vld [vmem:[#allocation3 + $0x72c] ss:$16 sps:$4 sm:$0xff]   ;;  %v3065_v18 = vld [vmem:[#allocation3 + $0x528] ss:$16 sps:$4 sm:$0xff]  }
  0xc9   :  { %1850 = vmatprep.subr.bf16.mxu1 %v2980_v19  ;;  %v3068_v19 = vld [vmem:[#allocation3 + $0x728] ss:$16 sps:$4 sm:$0xff]  }
  0xcb   :  { %1810 = vmatpush2.bf16.msra.mxu0 %v2975_v20  ;;  %v3073_v20 = vld [vmem:[#allocation3 + $0x50c] ss:$16 sps:$4 sm:$0xff]  }
  0xcc   :  { %1851 = vmatpush2.bf16.msra.mxu1 %v2978_v21  ;;  %1861 = vmatprep.subr.bf16.mxu0 %v2983_v22  ;;  %v3076_v21 = vld [vmem:[#allocation3 + $0x70c] ss:$16 sps:$4 sm:$0xff]   ;;  %v3071_v22 = vld [vmem:[#allocation3 + $0x508] ss:$16 sps:$4 sm:$0xff]  }
  0xcd   :  { %1902 = vmatprep.subr.bf16.mxu1 %v2986_v23  ;;  %v3074_v23 = vld [vmem:[#allocation3 + $0x708] ss:$16 sps:$4 sm:$0xff]  }
  0xce   :  { %1812 = vmatmul.mubr.bf16.vlgmr.msra.gmra.mxu0 %v3179_v6  ;;  %v3001_v6 = vld [vmem:[#allocation3 + $0x48c] ss:$16 sps:$4 sm:$0xff]  }
  0xcf   :  { %1853 = vmatmul.mubr.bf16.vlgmr.msra.gmra.mxu1 %v3181_v7  ;;  %1862 = vmatpush1.bf16.msra.mxu0 %v2981_v24  ;;  %v2999_v7 = vld [vmem:[#allocation3 + $0x488] ss:$16 sps:$4 sm:$0xff]  }
  0xd0   :  { %1903 = vmatpush1.bf16.msra.mxu1 %v2984_v25  ;;  %1863 = vmatprep.subr.bf16.mxu0 %v2989_v26  ;;  %v3077_v24 = vld [vmem:[%s3334_s3 + $0x78] sm:$0xff]   ;;  %v3079_v26 = vld [vmem:[%s3334_s3 + $0x70] sm:$0xff]  }
  0xd1   :  { %1904 = vmatprep.subr.bf16.mxu1 %v2992_v27  ;;  %1893 = vmatprep.mubr.bf16.mxu0 %v3197_v36  ;;  %v3005_v36 = vld [vmem:[#allocation3 + $0x468] ss:$16 sps:$4 sm:$0xff]  }
  0xd2   :  { %1934 = vmatprep.mubr.bf16.mxu1 %v3201_v37  ;;  %v3008_v37 = vld [vmem:[#allocation3 + $0x668] ss:$16 sps:$4 sm:$0xff]  }
  0xd3   :  { %1864 = vmatpush1.bf16.msra.mxu0 %v2987_v28  ;;  %v3078_v25 = vld [vmem:[%s3334_s3 + $0x38] sm:$0xff]  }
  0xd4   :  { %1905 = vmatpush1.bf16.msra.mxu1 %v2990_v29  ;;  %1865 = vmatprep.subr.bf16.mxu0 %v2995_v30  ;;  %v3080_v30 = vld [vmem:[%s3334_s3 + $0x30] sm:$0xff]  }
  0xd5   :  { %1906 = vmatprep.subr.bf16.mxu1 %v2998_v31 }
  0xd7   :  { %1866 = vmatpush1.bf16.msra.mxu0 %v2993_v32 }
  0xd8   :  { %1907 = vmatpush1.bf16.msra.mxu1 %v2996_v33  ;;  %1867 = vmatprep.subr.bf16.mxu0 %v3001_v6  ;;  %v3081_v33 = vld [vmem:[%s3334_s3 + $0x68] sm:$0xff]  }
  0xd9   :  { %1908 = vmatprep.subr.bf16.mxu1 %v3004_v34 }
  0xdb   :  { %1868 = vmatpush1.bf16.msra.mxu0 %v2999_v7 }
  0xdc   :  { %1909 = vmatpush1.bf16.msra.mxu1 %v3002_v47  ;;  %1869 = vmatprep.subr.bf16.mxu0 %v3007_v51  ;;  %v3093_v51 = vld [vmem:[%s3334_s3 + $0xf8] sm:$0xff]  }
  0xdd   :  { %1910 = vmatprep.subr.bf16.mxu1 %v3010_v35  ;;  %v3094_v35 = vld [vmem:[%s3334_s3 + $0xb8] sm:$0xff]  }
  0xdf   :  { %1870 = vmatpush1.bf16.msra.mxu0 %v3005_v36  ;;  %v3095_v36 = vld [vmem:[%s3334_s3 + $0xf0] sm:$0xff]  }
  0xe0   :  { %1911 = vmatpush1.bf16.msra.mxu1 %v3008_v37  ;;  %1871 = vmatprep.subr.bf16.mxu0 %v3013_v38  ;;  %v3084_v37 = vld [vmem:[%s3334_s3 + $0x20] sm:$0xff]   ;;  %v3096_v38 = vld [vmem:[%s3334_s3 + $0xb0] sm:$0xff]  }
  0xe1   :  { %1912 = vmatprep.subr.bf16.mxu1 %v3016_v39  ;;  %v3085_v39 = vld [vmem:[%s3334_s3 + $0x58] sm:$0xff]  }
  0xe3   :  { %1872 = vmatpush1.bf16.msra.mxu0 %v3011_v40  ;;  %v3097_v40 = vld [vmem:[%s3334_s3 + $0xe8] sm:$0xff]  }
  0xe4   :  { %1913 = vmatpush1.bf16.msra.mxu1 %v3014_v41  ;;  %1873 = vmatprep.subr.bf16.mxu0 %v3019_v42  ;;  %v3086_v41 = vld [vmem:[%s3334_s3 + $0x18] sm:$0xff]   ;;  %v3098_v42 = vld [vmem:[%s3334_s3 + $0xa8] sm:$0xff]  }
  0xe5   :  { %1914 = vmatprep.subr.bf16.mxu1 %v3022_v43  ;;  %v3087_v43 = vld [vmem:[%s3334_s3 + $0x50] sm:$0xff]  }
  0xe7   :  { %1874 = vmatpush1.bf16.msra.mxu0 %v3017_v44  ;;  %v3099_v44 = vld [vmem:[%s3334_s3 + $0xe0] sm:$0xff]  }
  0xe8   :  { %1915 = vmatpush1.bf16.msra.mxu1 %v3020_v45  ;;  %1875 = vmatprep.subr.bf16.mxu0 %v3025_v46  ;;  %v3088_v45 = vld [vmem:[%s3334_s3 + $0x10] sm:$0xff]   ;;  %v3100_v46 = vld [vmem:[%s3334_s3 + $0xa0] sm:$0xff]  }
  0xe9   :  { %1916 = vmatprep.subr.bf16.mxu1 %v3028_v48  ;;  %v3089_v48 = vld [vmem:[%s3334_s3 + $0x48] sm:$0xff]  }
  0xeb   :  { %1876 = vmatpush1.bf16.msra.mxu0 %v3023_v49  ;;  %v3101_v49 = vld [vmem:[%s3334_s3 + $0xd8] sm:$0xff]  }
  0xec   :  { %1917 = vmatpush1.bf16.msra.mxu1 %v3026_v50  ;;  %1877 = vmatprep.subr.bf16.mxu0 %v3031_v52  ;;  %v3090_v50 = vld [vmem:[%s3334_s3 + $0x8] sm:$0xff]   ;;  %v3102_v52 = vld [vmem:[%s3334_s3 + $0x98] sm:$0xff]  }
  0xed   :  { %1918 = vmatprep.subr.bf16.mxu1 %v3034_v53  ;;  %v3091_v53 = vld [vmem:[%s3334_s3 + $0x40] sm:$0xff]  }
  0xef   :  { %1878 = vmatpush2.bf16.msra.mxu0 %v3029_v54  ;;  %v3092_v54 = vld [vmem:[%s3334_s3] sm:$0xff]  }
  0xf0   :  { %1919 = vmatpush2.bf16.msra.mxu1 %v3032_v55  ;;  %1879 = vmatprep.subr.bf16.mxu0 %v3037_v56  ;;  %v1960_v55 = vlaneseq }
  0xf1   :  { %1920 = vmatprep.subr.bf16.mxu1 %v3040_v57 }
  0xf2   :  { %v1961_v56 = vshrl.u32 %v1960_v55, 7 }
  0xf3   :  { %1880 = vmatpush2.bf16.msra.mxu0 %v3035_v58  ;;  %v1958_v58 = vld [vmem:[%s3333_s2] sm:$0xf] }
  0xf4   :  { %1921 = vmatpush2.bf16.msra.mxu1 %v3038_v59  ;;  %1881 = vmatprep.subr.bf16.mxu0 %v3043_v60  ;;  %v1962_v57 = vsub.s32 0, %v1961_v56  ;;  %v1966_v59 = vsub.s32 1, %v1961_v56 }
  0xf5   :  { %1922 = vmatprep.subr.bf16.mxu1 %v3046_v61 }
  0xf7   :  { %1882 = vmatpush2.bf16.msra.mxu0 %v3041_v62  ;;  %v3103_v62 = vld [vmem:[%s3334_s3 + $0xd0] sm:$0xff]  }
  0xf8   :  { %1923 = vmatpush2.bf16.msra.mxu1 %v3044_v63  ;;  %1883 = vmatprep.subr.bf16.mxu0 %v3049_v0 }
  0xf9   :  { %1924 = vmatprep.subr.bf16.mxu1 %v3052_v1  ;;  %v1963_v1 = vrot.slane %v1958_v58, %v1962_v57 }
  0xfb   :  { %1884 = vmatpush2.bf16.msra.mxu0 %v3047_v2  ;;  %v3104_v2 = vld [vmem:[%s3334_s3 + $0x90] sm:$0xff]  }
  0xfc   :  { %1925 = vmatpush2.bf16.msra.mxu1 %v3050_v3  ;;  %1885 = vmatprep.subr.bf16.mxu0 %v3055_v4 }
  0xfd   :  { %1926 = vmatprep.subr.bf16.mxu1 %v3058_v5 }
  0xff   :  { %1886 = vmatpush2.bf16.msra.mxu0 %v3053_v8 }
 0x100   :  { %1927 = vmatpush2.bf16.msra.mxu1 %v3056_v9  ;;  %1887 = vmatprep.subr.bf16.mxu0 %v3061_v10  ;;  %v1967_v9 = vrot.slane %v1958_v58, %v1966_v59 }
 0x101   :  { %1928 = vmatprep.subr.bf16.mxu1 %v3064_v11 }
 0x103   :  { %1888 = vmatpush2.bf16.msra.mxu0 %v3059_v12  ;;  %v3105_v12 = vld [vmem:[%s3334_s3 + $0xc8] sm:$0xff]  }
 0x104   :  { %1929 = vmatpush2.bf16.msra.mxu1 %v3062_v13  ;;  %1889 = vmatprep.subr.bf16.mxu0 %v3067_v14 }
 0x105   :  { %1930 = vmatprep.subr.bf16.mxu1 %v3070_v15  ;;  %v3106_v15 = vld [vmem:[%s3334_s3 + $0x88] sm:$0xff]  }
 0x107   :  { %1890 = vmatpush2.bf16.msra.mxu0 %v3065_v18 }
 0x108   :  { %1931 = vmatpush2.bf16.msra.mxu1 %v3068_v19  ;;  %1891 = vmatprep.subr.bf16.mxu0 %v3073_v20 }
 0x109   :  { %1932 = vmatprep.subr.bf16.mxu1 %v3076_v21 }
 0x10b   :  { %1892 = vmatpush2.bf16.msra.mxu0 %v3071_v22  ;;  %v3107_v22 = vld [vmem:[%s3334_s3 + $0xc0] sm:$0xff]  }
 0x10c   :  { %1933 = vmatpush2.bf16.msra.mxu1 %v3074_v23  ;;  %2638 = vmatprep.subr.bf16.mxu0 %v3077_v24  ;;  %v3108_v24 = vld [vmem:[%s3334_s3 + $0x80] sm:$0xff]  }
 0x10d   :  { %2660 = vmatprep.subr.bf16.mxu1 %v3093_v51 }
 0x10e   :  { %v1649_v27 = vpop.f32.mrf.mxu0  ;;  %1894 = vmatmul.mubr.bf16.vlgmr.msra.gmra.mxu0 %v3207_v16  ;;  %v3082_v16 = vld [vmem:[%s3334_s3 + $0x28] sm:$0xff]  }
 0x10f   :  { %v1690_v28 = vpop.f32.mrf.mxu1  ;;  %1935 = vmatmul.mubr.bf16.vlgmr.msra.gmra.mxu1 %v3211_v17  ;;  %2639 = vmatpush3.bf16.msra.mxu0 %v3078_v25  ;;  %v3083_v17 = vld [vmem:[%s3334_s3 + $0x60] sm:$0xff]  }
 0x110   :  { %v3232_v29 = vadd.f32 %v1690_v28, %v1649_v27  ;;  %v1651_v31 = vpop.f32.mrf.mxu0  ;;  %2640 = vmatprep.subr.bf16.mxu0 %v3079_v26  ;;  %2661 = vmatpush3.bf16.msra.mxu1 %v3094_v35 }
 0x111   :  { %v1692_v32 = vpop.f32.mrf.mxu1  ;;  %2662 = vmatprep.subr.bf16.mxu1 %v3095_v36 }
 0x112   :  { %v1653_v6 = vpop.f32.mrf.mxu0  ;;  %v1693_v63 = vadd.f32 %v1692_v32, %v1651_v31 }
 0x113   :  { %v1694_v34 = vpop.f32.mrf.mxu1  ;;  %2641 = vmatpush3.bf16.msra.mxu0 %v3080_v30 }
 0x114   :  { %v1654_v7 = vpop.f32.mrf.mxu0  ;;  %2642 = vmatprep.subr.bf16.mxu0 %v3081_v33  ;;  %2663 = vmatpush3.bf16.msra.mxu1 %v3096_v38 }
 0x115   :  { %v1695_v47 = vpop.f32.mrf.mxu1  ;;  %2664 = vmatprep.subr.bf16.mxu1 %v3097_v40 }
 0x117   :  { %2643 = vmatpush3.bf16.msra.mxu0 %v3082_v16  ;;  %v1970_v16 = vsub.s32 2, %v1961_v56 }
 0x118   :  { %2644 = vmatprep.subr.bf16.mxu0 %v3083_v17  ;;  %2665 = vmatpush3.bf16.msra.mxu1 %v3098_v42  ;;  %v1974_v17 = vsub.s32 3, %v1961_v56 }
 0x119   :  { %2666 = vmatprep.subr.bf16.mxu1 %v3099_v44  ;;  %v1971_v36 = vrot.slane %v1958_v58, %v1970_v16 }
 0x11b   :  { %2645 = vmatpush3.bf16.msra.mxu0 %v3084_v37 }
 0x11c   :  { %2646 = vmatprep.subr.bf16.mxu0 %v3085_v39  ;;  %2667 = vmatpush3.bf16.msra.mxu1 %v3100_v46 }
 0x11d   :  { %2668 = vmatprep.subr.bf16.mxu1 %v3101_v49 }
 0x11f   :  { %2647 = vmatpush3.bf16.msra.mxu0 %v3086_v41  ;;  %v1975_v41 = vrot.slane %v1958_v58, %v1974_v17  ;;  %v2605_v58 = vld [vmem:[%s3335_s4] ss:$0 sm:$0xff] }
 0x120   :  { %2648 = vmatprep.subr.bf16.mxu0 %v3087_v43  ;;  %2669 = vmatpush3.bf16.msra.mxu1 %v3102_v52 }
 0x121   :  { %2670 = vmatprep.subr.bf16.mxu1 %v3103_v62 }
 0x123   :  { %2649 = vmatpush3.bf16.msra.mxu0 %v3088_v45 }
 0x124   :  { %2650 = vmatprep.subr.bf16.mxu0 %v3089_v48  ;;  %2671 = vmatpush3.bf16.msra.mxu1 %v3104_v2 }
 0x125   :  { %2672 = vmatprep.subr.bf16.mxu1 %v3105_v12 }
 0x127   :  { %2651 = vmatpush3.bf16.msra.mxu0 %v3090_v50 }
 0x128   :  { %2652 = vmatprep.subr.bf16.mxu0 %v3091_v53  ;;  %2673 = vmatpush3.bf16.msra.mxu1 %v3106_v15 }
 0x129   :  { %2674 = vmatprep.subr.bf16.mxu1 %v3107_v22 }
 0x12b   :  { %2653 = vmatpush3.bf16.msra.mxu0 %v3092_v54 }
 0x12c   :  { %2675 = vmatpush3.bf16.msra.mxu1 %v3108_v24 }
 0x14e   :  { %v1731_v60 = vpop.f32.mrf.mxu0 }
 0x14f   :  { %v1772_v61 = vpop.f32.mrf.mxu1  ;;  %v1732_v0 = vadd.f32 %v1731_v60, %v3232_v29 }
 0x150   :  { %v1733_v3 = vpop.f32.mrf.mxu0 }
 0x151   :  { %v1774_v4 = vpop.f32.mrf.mxu1  ;;  %v1773_v5 = vadd.f32 %v1772_v61, %v1732_v0  ;;  %v1734_v8 = vadd.f32 %v1733_v3, %v1693_v63 }
 0x152   :  { %v1735_v10 = vpop.f32.mrf.mxu0 }
 0x153   :  { %v1776_v11 = vpop.f32.mrf.mxu1  ;;  %v1980_v13 = vadd.f32 %v1963_v1, %v1773_v5  ;;  %v1775_v14 = vadd.f32 %v1774_v4, %v1734_v8 }
 0x154   :  { %v1736_v18 = vpop.f32.mrf.mxu0 }
 0x155   :  { %v1777_v19 = vpop.f32.mrf.mxu1  ;;  %v1981_v20 = vadd.f32 %v1967_v9, %v1775_v14  ;;  %v1984_v21 = vmax.f32 %v1980_v13, 0.0 }
 0x157   :  { %v1985_v23 = vmax.f32 %v1981_v20, 0.0  ;;  %v1988_v26 = vpack.c.bf16 %v1984_v21, %v1984_v21 }
 0x159   :  { %v1989_v25 = vpack.c.bf16 %v1985_v23, %v1985_v23 }
 0x15b   :  { %2287 = vmatprep.mubr.bf16.mxu0 %v1989_v25 }
 0x15c   :  { %2288 = vmatmul.mubr.bf16.vlgmr.msra.gmra.mxu0 %v1988_v26 }
 0x18e   :  { %v1813_v27 = vpop.f32.mrf.mxu0 }
 0x18f   :  { %v1854_v28 = vpop.f32.mrf.mxu1 }
 0x190   :  { %v1855_v29 = vadd.f32 %v1854_v28, %v1813_v27  ;;  %v1815_v30 = vpop.f32.mrf.mxu0 }
 0x191   :  { %v1856_v31 = vpop.f32.mrf.mxu1 }
 0x192   :  { %v1817_v32 = vpop.f32.mrf.mxu0  ;;  %v1857_v51 = vadd.f32 %v1856_v31, %v1815_v30 }
 0x193   :  { %v1858_v33 = vpop.f32.mrf.mxu1 }
 0x194   :  { %v1818_v6 = vpop.f32.mrf.mxu0 }
 0x195   :  { %v1859_v34 = vpop.f32.mrf.mxu1 }
 0x1ce   :  { %v1895_v7 = vpop.f32.mrf.mxu0 }
 0x1cf   :  { %v1936_v47 = vpop.f32.mrf.mxu1  ;;  %v1896_v35 = vadd.f32 %v1895_v7, %v1855_v29 }
 0x1d0   :  { %v1897_v37 = vpop.f32.mrf.mxu0 }
 0x1d1   :  { %v1938_v38 = vpop.f32.mrf.mxu1  ;;  %v1937_v39 = vadd.f32 %v1936_v47, %v1896_v35  ;;  %v1898_v40 = vadd.f32 %v1897_v37, %v1857_v51 }
 0x1d2   :  { %v1899_v42 = vpop.f32.mrf.mxu0 }
 0x1d3   :  { %v1940_v43 = vpop.f32.mrf.mxu1  ;;  %v1982_v44 = vadd.f32 %v1971_v36, %v1937_v39  ;;  %v1939_v45 = vadd.f32 %v1938_v38, %v1898_v40 }
 0x1d4   :  { %v1900_v46 = vpop.f32.mrf.mxu0 }
 0x1d5   :  { %v1941_v48 = vpop.f32.mrf.mxu1  ;;  %v1983_v49 = vadd.f32 %v1975_v41, %v1939_v45  ;;  %v1986_v50 = vmax.f32 %v1982_v44, 0.0 }
 0x1d7   :  { %v1987_v52 = vmax.f32 %v1983_v49, 0.0  ;;  %v1990_v54 = vpack.c.bf16 %v1986_v50, %v1986_v50 }
 0x1d9   :  { %v1991_v53 = vpack.c.bf16 %v1987_v52, %v1987_v52 }
 0x1db   :  { %2327 = vmatprep.mubr.bf16.mxu1 %v1991_v53 }
 0x1dc   :  { %2328 = vmatmul.mubr.bf16.vlgmr.msra.gmra.mxu1 %v1990_v54 }
 0x21c   :  { %v2654_v55 = vpop.f32.mrf.mxu0 }
 0x21e   :  { %v2655_v56 = vpop.f32.mrf.mxu0 }
 0x21f   :  { %v2656_v57 = vadd.f32 %v2655_v56, %v2654_v55 }
 0x220   :  { %v2657_v59 = vpop.f32.mrf.mxu0 }
 0x221   :  { %v2290_v63 = vadd.f32 %v2656_v57, %v2605_v58 }
 0x222   :  { %v2658_v60 = vpop.f32.mrf.mxu0 }
 0x29c   :  { %v2676_v61 = vpop.f32.mrf.mxu1 }
 0x29e   :  { %v2677_v62 = vpop.f32.mrf.mxu1 }
 0x29f   :  { %v2678_v0 = vadd.f32 %v2677_v62, %v2676_v61 }
 0x2a0   :  { %v2679_v1 = vpop.f32.mrf.mxu1 }
 0x2a1   :  { %v2330_v2 = vadd.f32 %v2678_v0, %v2290_v63 }
 0x2a2   :  { %v2680_v3 = vpop.f32.mrf.mxu1 }
 0x2a3   :  { %2335 = vst [vmem:[%s3336_s5] sm:$0xff] %v2330_v2 }
 0x2a4   :  { %2340 = vsyncpa [#allocation4], 1 }

</bundles_post_ra>
